<compile_context>
chip_gen: v6e
topology: v6e:2x2x1
jax: 0.10.0
libtpu: 0.0.40
codegen_flags: <defaults>
</compile_context>

<pallas_src>
import numpy as np
import jax
import jax.numpy as jnp
from jax import lax
from jax.experimental import pallas as pl
from jax.experimental.pallas import tpu as pltpu

SLOPE = 0.2      # args.slope
EPS = 1e-5       # InstanceNorm2d default eps
KS = 3           # conv kernel size


def _bilinear_matrix(in_size: int, out_size: int) -> np.ndarray:
    """1-D resampling matrix matching PyTorch bilinear upsample, align_corners=False."""
    U = np.zeros((out_size, in_size), dtype=np.float32)
    scale = in_size / out_size
    for i in range(out_size):
        src = (i + 0.5) * scale - 0.5
        src = max(src, 0.0)
        i0 = min(int(np.floor(src)), in_size - 1)
        i1 = min(i0 + 1, in_size - 1)
        w1 = src - i0
        U[i, i0] += 1.0 - w1
        U[i, i1] += w1
    return U


def _padded_upsample_matrix(in_size: int, out_size: int) -> np.ndarray:
    """(out_size+2, in_size): bilinear x2 upsample + 1-px zero pad on the output axis."""
    Up = np.zeros((out_size + 2, in_size), dtype=np.float32)
    Up[1:out_size + 1] = _bilinear_matrix(in_size, out_size)
    return Up


def _up_conv_inorm_lrelu_kernel(x_ref, uwT_ref, v_ref, gamma_ref, beta_ref, o_ref):
    """Per-sample fused bilinear-x2 upsample + 3x3 conv + InstanceNorm + LeakyReLU.

    x_ref     : (1, Cin*H, W)        f32  input sample, row index = ci*H + h
    uwT_ref   : (3, W, OW)           f32  per-kx width upsample+pad+shift (transposed)
    v_ref     : (3, Cout*OH, Cin*H)  f32  conv weight folded with the per-ky
                                          height upsample+pad+shift operator
    gamma_ref : (Cout, 1, 1)         f32  InstanceNorm affine scale
    beta_ref  : (Cout, 1, 1)         f32  InstanceNorm affine shift
    o_ref     : (1, Cout, OH, OW)    f32  output sample (NCHW block)
    """
    _, cout, oh, ow = o_ref.shape
    x2 = x_ref[0]                                                  # (Cin*H, W)

    # Upsample + pad + conv as three accumulated rank-2 MXU dots (one per kx).
    acc = None
    for kx in range(KS):
        xw = jnp.dot(x2, uwT_ref[kx],
                     preferred_element_type=jnp.float32)           # (Cin*H, OW)
        term = jnp.dot(v_ref[kx], xw,
                       preferred_element_type=jnp.float32)         # (Cout*OH, OW)
        acc = term if acc is None else acc + term

    # Sublane-block split (32 % 8 == 0, minor dim unchanged) -> layout preserving.
    y = acc.reshape(cout, oh, ow)                                  # (Cout, OH, OW)

    # InstanceNorm2d (training-mode per-instance stats over HxW), fused epilogue:
    # sum / sum-of-squares from one read of y, then a single y*scale + shift FMA.
    inv_n = 1.0 / float(oh * ow)
    s1 = jnp.sum(jnp.sum(y, axis=2, keepdims=True), axis=1, keepdims=True)
    s2 = jnp.sum(jnp.sum(y * y, axis=2, keepdims=True), axis=1, keepdims=True)
    mean = s1 * inv_n                                              # (Cout, 1, 1)
    var = jnp.maximum(s2 * inv_n - mean * mean, 0.0)
    scale = lax.rsqrt(var + EPS) * gamma_ref[...]                  # rsqrt on the EUP
    shift = beta_ref[...] - mean * scale
    y = y * scale + shift

    # LeakyReLU(0.2)
    y = jnp.where(y >= 0, y, SLOPE * y)

    o_ref[0] = y.astype(o_ref.dtype)


@jax.jit
def conv_block_forward(x_nchw, weight, gamma, beta):
    """ConvBlock forward. x_nchw: (N, Cin, H, W) f32, weight: (Cout, Cin, 3, 3)."""
    N, Cin, H, W = x_nchw.shape
    Cout = weight.shape[0]
    OH, OW = 2 * H, 2 * W

    # Host-side (trace-time) separable operators, ~2 KiB of constants.
    uh_pad = _padded_upsample_matrix(H, OH)                              # (OH+2, H)
    uw_pad = _padded_upsample_matrix(W, OW)                              # (OW+2, W)
    uh_shift = np.stack([uh_pad[ky:ky + OH, :] for ky in range(KS)])     # (3, OH, H)
    uw_shift = np.stack([uw_pad[kx:kx + OW, :] for kx in range(KS)])     # (3, OW, W)
    uwT_all = jnp.asarray(np.transpose(uw_shift, (0, 2, 1)))             # (3, W, OW)

    # Fold the conv weight into the height operator (tiny weight-prep einsum):
    #   V[kx, co, i, ci, h] = sum_ky W[co, ci, ky, kx] * Uh_pad[i + ky, h]
    v_all = jnp.einsum("ocyx,yih->xoich",
                       weight.astype(jnp.float32),
                       jnp.asarray(uh_shift),
                       precision=lax.Precision.HIGHEST)
    v_all = v_all.reshape(KS, Cout * OH, Cin * H)                        # (3, Cout*OH, Cin*H)

    # NCHW stays NCHW: only free reshapes, no transposes, all f32.
    x_rows = x_nchw.reshape(N, Cin * H, W).astype(jnp.float32)
    gamma3 = gamma.reshape(Cout, 1, 1).astype(jnp.float32)
    beta3 = beta.reshape(Cout, 1, 1).astype(jnp.float32)

    return pl.pallas_call(
        _up_conv_inorm_lrelu_kernel,
        out_shape=jax.ShapeDtypeStruct((N, Cout, OH, OW), jnp.float32),
        grid_spec=pltpu.PrefetchScalarGridSpec(
            num_scalar_prefetch=0,
            grid=(N,),
            in_specs=[
                pl.BlockSpec((1, Cin * H, W), lambda n: (n, 0, 0)),
                pl.BlockSpec((KS, W, OW), lambda n: (0, 0, 0)),
                pl.BlockSpec((KS, Cout * OH, Cin * H), lambda n: (0, 0, 0)),
                pl.BlockSpec((Cout, 1, 1), lambda n: (0, 0, 0)),
                pl.BlockSpec((Cout, 1, 1), lambda n: (0, 0, 0)),
            ],
            out_specs=pl.BlockSpec((1, Cout, OH, OW), lambda n: (n, 0, 0, 0)),
        ),
        compiler_params=pltpu.CompilerParams(
            dimension_semantics=("parallel",),
        ),
    )(x_rows, uwT_all, v_all, gamma3, beta3)


def conv_block_reference(x_nchw, weight, gamma, beta):
    """Pure-JAX f32 reference of the same forward, for verification."""
    N, Cin, H, W = x_nchw.shape
    Uh = jnp.asarray(_bilinear_matrix(H, 2 * H))
    Uw = jnp.asarray(_bilinear_matrix(W, 2 * W))
    xu = jnp.einsum("ph,nchw->ncpw", Uh, x_nchw)
    xu = jnp.einsum("qw,ncpw->ncpq", Uw, xu)
    y = lax.conv_general_dilated(
        xu, weight, window_strides=(1, 1), padding=((1, 1), (1, 1)),
        dimension_numbers=("NCHW", "OIHW", "NCHW"))
    mean = jnp.mean(y, axis=(2, 3), keepdims=True)
    var = jnp.mean((y - mean) ** 2, axis=(2, 3), keepdims=True)
    yhat = (y - mean) * lax.rsqrt(var + EPS)
    y = yhat * gamma.reshape(1, -1, 1, 1) + beta.reshape(1, -1, 1, 1)
    return jnp.where(y >= 0, y, SLOPE * y)


if __name__ == "__main__":
    key = jax.random.PRNGKey(0)
    k_x, k_w, k_g, k_b = jax.random.split(key, 4)

    N, Cin, H, W = 2, 4, 16, 16
    Cout = 8

    x = jax.random.normal(k_x, (N, Cin, H, W), jnp.float32)

    # Conv2d weight: Kaiming-uniform-style init (bias=False).
    fan_in = Cin * KS * KS
    bound = 1.0 / np.sqrt(fan_in)
    weight = jax.random.uniform(k_w, (Cout, Cin, KS, KS), jnp.float32, -bound, bound)

    # InstanceNorm2d(affine=True) parameters (perturbed to exercise the affine path).
    gamma = 1.0 + 0.1 * jax.random.normal(k_g, (Cout,), jnp.float32)
    beta = 0.1 * jax.random.normal(k_b, (Cout,), jnp.float32)

    out = conv_block_forward(x, weight, gamma, beta)
    out = jax.block_until_ready(out)

    ref = conv_block_reference(x, weight, gamma, beta)
    # Kernel math is f32 end-to-end now; the tolerance is kept conservative only
    # to cover the MXU/XLA default f32 matmul pass decomposition on both sides.
    np.testing.assert_allclose(np.asarray(out), np.asarray(ref), rtol=2e-2, atol=2e-2)

    print("KERNEL_OK")
</pallas_src>

<mosaic_0001>
module attributes {stable_mosaic.version = 11 : i64} {
  func.func @_up_conv_inorm_lrelu_kernel(%arg0: i32, %arg1: memref<1x64x16xf32, #tpu.memory_space<vmem>>, %arg2: memref<3x16x32xf32, #tpu.memory_space<vmem>>, %arg3: memref<3x256x64xf32, #tpu.memory_space<vmem>>, %arg4: memref<8x1x1xf32, #tpu.memory_space<vmem>>, %arg5: memref<8x1x1xf32, #tpu.memory_space<vmem>>, %arg6: memref<1x8x32x32xf32, #tpu.memory_space<vmem>>) attributes {dimension_semantics = [#tpu.dimension_semantics<parallel>], iteration_bounds = array<i64: 2>, scalar_prefetch = 0 : i64, scratch_operands = 0 : i64, tpu.core_type = #tpu.core_type<tc>, window_params = [{transform_indices = @transform_0, window_bounds = array<i64: 1, 64, 16>}, {pipeline_mode = #tpu.pipeline_mode<synchronous>, transform_indices = @transform_1, window_bounds = array<i64: 3, 16, 32>}, {pipeline_mode = #tpu.pipeline_mode<synchronous>, transform_indices = @transform_2, window_bounds = array<i64: 3, 256, 64>}, {pipeline_mode = #tpu.pipeline_mode<synchronous>, transform_indices = @transform_3, window_bounds = array<i64: 8, 1, 1>}, {pipeline_mode = #tpu.pipeline_mode<synchronous>, transform_indices = @transform_4, window_bounds = array<i64: 8, 1, 1>}, {transform_indices = @transform_5, window_bounds = array<i64: 1, 8, 32, 32>}]} {
    %c0 = arith.constant 0 : index
    %c0_0 = arith.constant 0 : index
    %c0_1 = arith.constant 0 : index
    %0 = vector.load %arg1[%c0, %c0_0, %c0_1] : memref<1x64x16xf32, #tpu.memory_space<vmem>>, vector<1x64x16xf32>
    %1 = vector.shape_cast %0 : vector<1x64x16xf32> to vector<64x16xf32>
    %c0_2 = arith.constant 0 : index
    %c0_3 = arith.constant 0 : index
    %c0_4 = arith.constant 0 : index
    %2 = vector.load %arg2[%c0_2, %c0_3, %c0_4] : memref<3x16x32xf32, #tpu.memory_space<vmem>>, vector<1x16x32xf32>
    %3 = vector.shape_cast %2 : vector<1x16x32xf32> to vector<16x32xf32>
    %cst = arith.constant dense<0.000000e+00> : vector<64x32xf32>
    %4 = tpu.matmul %1, %3, %cst {dimension_numbers = #tpu.dot_dimension_numbers<[1], [0], [0], [1], [0, 0, 1, 1], [], []>} : vector<64x16xf32>, vector<16x32xf32>, vector<64x32xf32> -> vector<64x32xf32>
    %c0_5 = arith.constant 0 : index
    %c0_6 = arith.constant 0 : index
    %c0_7 = arith.constant 0 : index
    %5 = vector.load %arg3[%c0_5, %c0_6, %c0_7] : memref<3x256x64xf32, #tpu.memory_space<vmem>>, vector<1x256x64xf32>
    %6 = vector.shape_cast %5 : vector<1x256x64xf32> to vector<256x64xf32>
    %cst_8 = arith.constant dense<0.000000e+00> : vector<256x32xf32>
    %7 = tpu.matmul %6, %4, %cst_8 {dimension_numbers = #tpu.dot_dimension_numbers<[1], [0], [0], [1], [0, 0, 1, 1], [], []>} : vector<256x64xf32>, vector<64x32xf32>, vector<256x32xf32> -> vector<256x32xf32>
    %c1 = arith.constant 1 : index
    %c0_9 = arith.constant 0 : index
    %c0_10 = arith.constant 0 : index
    %8 = vector.load %arg2[%c1, %c0_9, %c0_10] : memref<3x16x32xf32, #tpu.memory_space<vmem>>, vector<1x16x32xf32>
    %9 = vector.shape_cast %8 : vector<1x16x32xf32> to vector<16x32xf32>
    %cst_11 = arith.constant dense<0.000000e+00> : vector<64x32xf32>
    %10 = tpu.matmul %1, %9, %cst_11 {dimension_numbers = #tpu.dot_dimension_numbers<[1], [0], [0], [1], [0, 0, 1, 1], [], []>} : vector<64x16xf32>, vector<16x32xf32>, vector<64x32xf32> -> vector<64x32xf32>
    %c1_12 = arith.constant 1 : index
    %c0_13 = arith.constant 0 : index
    %c0_14 = arith.constant 0 : index
    %11 = vector.load %arg3[%c1_12, %c0_13, %c0_14] : memref<3x256x64xf32, #tpu.memory_space<vmem>>, vector<1x256x64xf32>
    %12 = vector.shape_cast %11 : vector<1x256x64xf32> to vector<256x64xf32>
    %cst_15 = arith.constant dense<0.000000e+00> : vector<256x32xf32>
    %13 = tpu.matmul %12, %10, %cst_15 {dimension_numbers = #tpu.dot_dimension_numbers<[1], [0], [0], [1], [0, 0, 1, 1], [], []>} : vector<256x64xf32>, vector<64x32xf32>, vector<256x32xf32> -> vector<256x32xf32>
    %14 = arith.addf %7, %13 : vector<256x32xf32>
    %c2 = arith.constant 2 : index
    %c0_16 = arith.constant 0 : index
    %c0_17 = arith.constant 0 : index
    %15 = vector.load %arg2[%c2, %c0_16, %c0_17] : memref<3x16x32xf32, #tpu.memory_space<vmem>>, vector<1x16x32xf32>
    %16 = vector.shape_cast %15 : vector<1x16x32xf32> to vector<16x32xf32>
    %cst_18 = arith.constant dense<0.000000e+00> : vector<64x32xf32>
    %17 = tpu.matmul %1, %16, %cst_18 {dimension_numbers = #tpu.dot_dimension_numbers<[1], [0], [0], [1], [0, 0, 1, 1], [], []>} : vector<64x16xf32>, vector<16x32xf32>, vector<64x32xf32> -> vector<64x32xf32>
    %c2_19 = arith.constant 2 : index
    %c0_20 = arith.constant 0 : index
    %c0_21 = arith.constant 0 : index
    %18 = vector.load %arg3[%c2_19, %c0_20, %c0_21] : memref<3x256x64xf32, #tpu.memory_space<vmem>>, vector<1x256x64xf32>
    %19 = vector.shape_cast %18 : vector<1x256x64xf32> to vector<256x64xf32>
    %cst_22 = arith.constant dense<0.000000e+00> : vector<256x32xf32>
    %20 = tpu.matmul %19, %17, %cst_22 {dimension_numbers = #tpu.dot_dimension_numbers<[1], [0], [0], [1], [0, 0, 1, 1], [], []>} : vector<256x64xf32>, vector<64x32xf32>, vector<256x32xf32> -> vector<256x32xf32>
    %21 = arith.addf %14, %20 : vector<256x32xf32>
    %22 = vector.shape_cast %21 : vector<256x32xf32> to vector<8x32x32xf32>
    %cst_23 = arith.constant dense<0.000000e+00> : vector<8x32xf32>
    %23 = vector.multi_reduction <add>, %22, %cst_23 [2] : vector<8x32x32xf32> to vector<8x32xf32>
    %24 = vector.shape_cast %23 : vector<8x32xf32> to vector<8x32x1xf32>
    %cst_24 = arith.constant dense<0.000000e+00> : vector<8x1xf32>
    %25 = vector.multi_reduction <add>, %24, %cst_24 [1] : vector<8x32x1xf32> to vector<8x1xf32>
    %26 = vector.shape_cast %25 : vector<8x1xf32> to vector<8x1x1xf32>
    %27 = arith.mulf %22, %22 : vector<8x32x32xf32>
    %cst_25 = arith.constant dense<0.000000e+00> : vector<8x32xf32>
    %28 = vector.multi_reduction <add>, %27, %cst_25 [2] : vector<8x32x32xf32> to vector<8x32xf32>
    %29 = vector.shape_cast %28 : vector<8x32xf32> to vector<8x32x1xf32>
    %cst_26 = arith.constant dense<0.000000e+00> : vector<8x1xf32>
    %30 = vector.multi_reduction <add>, %29, %cst_26 [1] : vector<8x32x1xf32> to vector<8x1xf32>
    %31 = vector.shape_cast %30 : vector<8x1xf32> to vector<8x1x1xf32>
    %cst_27 = arith.constant 9.765625E-4 : f32
    %32 = vector.broadcast %cst_27 : f32 to vector<8x1x1xf32>
    %33 = arith.mulf %26, %32 : vector<8x1x1xf32>
    %cst_28 = arith.constant 9.765625E-4 : f32
    %34 = vector.broadcast %cst_28 : f32 to vector<8x1x1xf32>
    %35 = arith.mulf %31, %34 : vector<8x1x1xf32>
    %36 = arith.mulf %33, %33 : vector<8x1x1xf32>
    %37 = arith.subf %35, %36 : vector<8x1x1xf32>
    %cst_29 = arith.constant 0.000000e+00 : f32
    %38 = vector.broadcast %cst_29 : f32 to vector<8x1x1xf32>
    %39 = arith.maximumf %37, %38 : vector<8x1x1xf32>
    %cst_30 = arith.constant 9.99999974E-6 : f32
    %40 = vector.broadcast %cst_30 : f32 to vector<8x1x1xf32>
    %41 = arith.addf %39, %40 : vector<8x1x1xf32>
    %42 = math.rsqrt %41 : vector<8x1x1xf32>
    %c0_31 = arith.constant 0 : index
    %c0_32 = arith.constant 0 : index
    %c0_33 = arith.constant 0 : index
    %43 = vector.load %arg4[%c0_31, %c0_32, %c0_33] : memref<8x1x1xf32, #tpu.memory_space<vmem>>, vector<8x1x1xf32>
    %44 = arith.mulf %42, %43 : vector<8x1x1xf32>
    %c0_34 = arith.constant 0 : index
    %c0_35 = arith.constant 0 : index
    %c0_36 = arith.constant 0 : index
    %45 = vector.load %arg5[%c0_34, %c0_35, %c0_36] : memref<8x1x1xf32, #tpu.memory_space<vmem>>, vector<8x1x1xf32>
    %46 = arith.mulf %33, %44 : vector<8x1x1xf32>
    %47 = arith.subf %45, %46 : vector<8x1x1xf32>
    %48 = vector.broadcast %44 : vector<8x1x1xf32> to vector<8x32x32xf32>
    %49 = arith.mulf %22, %48 : vector<8x32x32xf32>
    %50 = vector.broadcast %47 : vector<8x1x1xf32> to vector<8x32x32xf32>
    %51 = arith.addf %49, %50 : vector<8x32x32xf32>
    %cst_37 = arith.constant 0.000000e+00 : f32
    %52 = vector.broadcast %cst_37 : f32 to vector<8x32x32xf32>
    %53 = arith.cmpf oge, %51, %52 : vector<8x32x32xf32>
    %cst_38 = arith.constant 2.000000e-01 : f32
    %54 = vector.broadcast %cst_38 : f32 to vector<8x32x32xf32>
    %55 = arith.mulf %54, %51 : vector<8x32x32xf32>
    %56 = arith.select %53, %51, %55 : vector<8x32x32xi1>, vector<8x32x32xf32>
    %c0_39 = arith.constant 0 : index
    %c0_40 = arith.constant 0 : index
    %c0_41 = arith.constant 0 : index
    %c0_42 = arith.constant 0 : index
    %57 = vector.load %arg6[%c0_39, %c0_40, %c0_41, %c0_42] : memref<1x8x32x32xf32, #tpu.memory_space<vmem>>, vector<1x8x32x32xf32>
    %58 = vector.shape_cast %57 : vector<1x8x32x32xf32> to vector<8x32x32xf32>
    %59 = vector.shape_cast %56 : vector<8x32x32xf32> to vector<1x8x32x32xf32>
    tpu.vector_store %arg6[%c0_39, %c0_40, %c0_41, %c0_42], %59 {strides = array<i32>} : memref<1x8x32x32xf32, #tpu.memory_space<vmem>>, vector<1x8x32x32xf32>,
    return
  }
  func.func @transform_0(%arg0: i32) -> (i32, i32, i32) {
    %c0_i32 = arith.constant 0 : i32
    %c0_i32_0 = arith.constant 0 : i32
    %c0_i32_1 = arith.constant 0 : i32
    return %arg0, %c0_i32, %c0_i32_0 : i32, i32, i32
  }
  func.func @transform_1(%arg0: i32) -> (i32, i32, i32) {
    %c0_i32 = arith.constant 0 : i32
    %c0_i32_0 = arith.constant 0 : i32
    %c0_i32_1 = arith.constant 0 : i32
    %c0_i32_2 = arith.constant 0 : i32
    return %c0_i32, %c0_i32_0, %c0_i32_1 : i32, i32, i32
  }
  func.func @transform_2(%arg0: i32) -> (i32, i32, i32) {
    %c0_i32 = arith.constant 0 : i32
    %c0_i32_0 = arith.constant 0 : i32
    %c0_i32_1 = arith.constant 0 : i32
    %c0_i32_2 = arith.constant 0 : i32
    return %c0_i32, %c0_i32_0, %c0_i32_1 : i32, i32, i32
  }
  func.func @transform_3(%arg0: i32) -> (i32, i32, i32) {
    %c0_i32 = arith.constant 0 : i32
    %c0_i32_0 = arith.constant 0 : i32
    %c0_i32_1 = arith.constant 0 : i32
    %c0_i32_2 = arith.constant 0 : i32
    return %c0_i32, %c0_i32_0, %c0_i32_1 : i32, i32, i32
  }
  func.func @transform_4(%arg0: i32) -> (i32, i32, i32) {
    %c0_i32 = arith.constant 0 : i32
    %c0_i32_0 = arith.constant 0 : i32
    %c0_i32_1 = arith.constant 0 : i32
    %c0_i32_2 = arith.constant 0 : i32
    return %c0_i32, %c0_i32_0, %c0_i32_1 : i32, i32, i32
  }
  func.func @transform_5(%arg0: i32) -> (i32, i32, i32, i32) {
    %c0_i32 = arith.constant 0 : i32
    %c0_i32_0 = arith.constant 0 : i32
    %c0_i32_1 = arith.constant 0 : i32
    %c0_i32_2 = arith.constant 0 : i32
    return %arg0, %c0_i32, %c0_i32_0, %c0_i32_1 : i32, i32, i32, i32
  }
}

</mosaic_0001>

<bundles_post_ra>
// kernel: conv_block_forward.1
= control target key start
LH: loop header
LB: loop body
LE: loop exit
PB: predicated region body
PF: predicated region fallthrough
CT: control target
= control target key end

     0   :  { %10 = vsyncpa [#allocation3], 0  ;;  %s4469_s0 = inlined_call_operand.vmem [shape: f32[2,64,16], index: 0, kind: input, shape index: {}]   ;;  %s4470_s1 = inlined_call_operand.vmem [shape: f32[3,16,32], index: 1, kind: input, shape index: {}]   ;;  %s4471_s2 = inlined_call_operand.vmem [shape: f32[3,256,64], index: 2, kind: input, shape index: {}]   ;;  %s4472_s3 = inlined_call_operand.vmem [shape: f32[8,1,1], index: 3, kind: input, shape index: {}]   ;;  %s4473_s4 = inlined_call_operand.vmem [shape: f32[8,1,1], index: 4, kind: input, shape index: {}]   ;;  %s4474_s5 = inlined_call_operand.hbm [shape: f32[2,8,32,32], index: 5, kind: output, shape index: {}]  }
   0x1   :  { %12 = vsyncpa [#allocation3 + $0x1], 0  ;;  %s3314_s18 = smov 0   ;;  %s3316_s19 = smov 0  }
   0x2   :  { %s3318_s20 = smov 0   ;;  %s3320_s21 = smov 0  }
   0x3 LB: > { %s3335_s22 = sadd.s32 4294967295, %s3278_s21   ;;  %s2550_s23 = sadd.s32 4294967294, %s3278_s21   ;;  %s3278_s21 = sphi %s3320_s21, %s4480_s21   ;;  %s3274_s20 = sphi %s3318_s20, %s4479_s20   ;;  %s3270_s19 = sphi %s3316_s19, %s4478_s19   ;;  %s3266_s18 = sphi %s3314_s18, %s4477_s18  }
   0x4   : > { %s3339_s24 = sadd.s32 1, %s3278_s21   ;;  %s135_s25 = sadd.s32 1, %s3274_s20 }
   0x5   : > { %s132_s26 = ssub.s32 %s3278_s21, %s3339_s24  ;;  %p145_p0 = scmp.ne.s32.totalorder %s3274_s20, %s3270_s19 }
   0x6   : > { %p133_p1 = scmp.eq.s32.totalorder %s132_s26, 0  ;;  %p146_p2 = scmp.eq.s32.totalorder %s3335_s22, 1 }
   0x7   : > { %p151_p3 = scmp.ne.s32.totalorder %s3270_s19, %s3266_s18  ;;  %p152_p4 = scmp.eq.s32.totalorder %s2550_s23, 1 }
   0x8   : > { %s3350_s27 = scalar_select %p133_p1, %s3274_s20, %s135_s25  }
   0x9   : > { %p3352_p5 = por %p146_p2, %p145_p0  ;;  %p3356_p6 = por %p152_p4, %p151_p3 }
   0xa   : > { %p2553_p7 = scmp.ge.s32.totalorder %s3278_s21, 1  ;;  %p190_p8 = scmp.lt.s32.totalorder %s3278_s21, 3 }
   0xc   : > { %p191_p9 = pnand %p2553_p7, %p190_p8 }
   0xd   : > { %p218_p10 = scmp.lt.s32.totalorder (!%p191_p9), %s3335_s22, 1  ;;  %s215_s6 = sand.u32 (!%p191_p9), 1, %s3270_s19  }
   0xe   : > { %194 = sbr.rel (%p191_p9) target bundleno = 1208 (0x4b8), region = 40  ;;  %s2554_s7 = sshll.u32 (!%p191_p9), %s215_s6, 8 }
   0xf   : > { %s4323_s8 = scalar_lea.vmem (!%p191_p9), [#allocation2], %s2554_s7  ;;  %s2751_s9 = sshll.u32 (!%p191_p9), %s3335_s22, 12 }
  0x10   : > { %s2488_s10 = sshll.u32 (!%p191_p9), %s4323_s8, 4  ;;  %s4414_s12 = scalar_lea.hbm (!%p191_p9), %s4474_s5, %s2751_s9  ;;  %s4416_s10 = int_to_ptr.vmem [resolvable:$true] %s2488_s10 }
  0x11   : > { %s3281_s15 = smov (!%p191_p9), [#allocation2]  }
  0x12   : > { %s3222_s16 = sshll.u32 (!%p191_p9), %s3281_s15, 4  ;;  %s3223_s16 = int_to_ptr.vmem [resolvable:$false] %s3222_s16 }
  0x13   : > { %v2566_v0 = vld [vmem:[%s4470_s1 + $0x18] sm:$0xff]  ;;  %v2565_v1 = vld [vmem:[%s4470_s1 + $0x10] sm:$0xff]  ;;  %v232_v2 = vld [vmem:[%s4470_s1 + $0x8] sm:$0xff]  ;;  %s219_s13 = scalar_select %p218_p10, %s3335_s22, 1  ;;  %vm233_vm0 = vcmask 130048   ;;  %vm536_vm1 = vcmask 523264  }
  0x14   : > { %2918 = vmatprep.subr.mxu1 %v2566_v0  ;;  %2902 = vmatprep.subr.mxu0 %v232_v2  ;;  %v231_v3 = vld [vmem:[%s4470_s1] sm:$0xff]  ;;  %v2576_v30 = vld [vmem:[%s4471_s2 + $0x108] sm:$0xff]  ;;  %v2577_v31 = vld [vmem:[%s4471_s2 + $0x110] sm:$0xff]  ;;  %vm1673_vm2 = vcmask 261120   ;;  %p3225_p0 = scmp.lt.s32.totalorder %s4416_s10, %s3223_s16 }
  0x15   : > { %2919 = vmatpush3.msra.mxu1 %v2566_v0  ;;  %2903 = vmatpush3.msra.mxu0 %v232_v2  ;;  %s2750_s14 = sshll.u32 %s219_s13, 6  ;;  %v2575_v12 = vld [vmem:[%s4471_s2 + $0x100] sm:$0xff]  ;;  %v376_v32 = vld [vmem:[%s4471_s2 + $0x68] sm:$0xff]  ;;  %v377_v33 = vld [vmem:[%s4471_s2 + $0x70] sm:$0xff]  ;;  %s4429_s13 = scalar_lea.sflag [#allocation3], %s215_s6 }
  0x16   : > { %2920 = vmatprep.subr.mxu1 %v2565_v1  ;;  %2904 = vmatprep.subr.mxu0 %v231_v3  ;;  %s222_s17 = scalar_lea.vmem %s4469_s0, %s2750_s14  ;;  %v375_v13 = vld [vmem:[%s4471_s2 + $0x60] sm:$0xff]  ;;  %v2578_v34 = vld [vmem:[%s4471_s2 + $0x118] sm:$0xff]  ;;  %v2580_v38 = vld [vmem:[%s4471_s2 + $0x128] sm:$0xff]  ;;  %s3218_s14 = scalar_lea.vmem %s4416_s10, 4096 }
  0x17   : > { %2921 = vmatpush3.msra.mxu1 %v2565_v1  ;;  %2905 = vmatpush3.msra.mxu0 %v231_v3  ;;  %v3379_v4 = vld [vmem:[%s222_s17] sm:$0xff]  ;;  %v3381_v5 = vld [vmem:[%s222_s17 + $0x8] sm:$0xff]  ;;  %v3383_v6 = vld [vmem:[%s222_s17 + $0x10] sm:$0xff]  ;;  %p3219_p11 = scmp.ne.s32.totalorder %s4416_s10, %s3218_s14 }
  0x18   : > { %2922 = vmatprep.mubr.msk.f32.mxu1 %vm233_vm0, %v3379_v4  ;;  %2906 = vmatprep.mubr.msk.f32.mxu0 %vm233_vm0, %v3379_v4  ;;  %v3395_v7 = vld [vmem:[%s222_s17 + $0x18] sm:$0xff]  ;;  %v3399_v8 = vld [vmem:[%s222_s17 + $0x20] sm:$0xff]  ;;  %v3407_v9 = vld [vmem:[%s222_s17 + $0x28] sm:$0xff] }
  0x19   : > { %2923 = vmatmul.mubr.msk.f32.vlgmr.msra.gmra.mxu1 %vm233_vm0, %v3381_v5  ;;  %2907 = vmatmul.mubr.msk.f32.vlgmr.msra.gmra.mxu0 %vm233_vm0, %v3381_v5  ;;  %v3411_v10 = vld [vmem:[%s222_s17 + $0x30] sm:$0xff]  ;;  %v3419_v11 = vld [vmem:[%s222_s17 + $0x38] sm:$0xff]  ;;  %v2579_v35 = vld [vmem:[%s4471_s2 + $0x120] sm:$0xff]  ;;  %p3220_p12 = pnand %p3219_p11, %p3352_p5  ;;  %s3224_s17 = scalar_lea.vmem %s3223_s16, 8192 }
  0x1a   : > { %2925 = vmatprep.mubr.msk.f32.mxu1 %vm233_vm0, %v3383_v6  ;;  %2909 = vmatprep.mubr.msk.f32.mxu0 %vm233_vm0, %v3383_v6  ;;  %v378_v36 = vld [vmem:[%s4471_s2 + $0x78] sm:$0xff]  ;;  %v379_v37 = vld [vmem:[%s4471_s2 + $0x80] sm:$0xff]  ;;  %v2581_v39 = vld [vmem:[%s4471_s2 + $0x130] sm:$0xff]  ;;  %p3226_p1 = scmp.lt.s32.totalorder %s3224_s17, %s3218_s14 }
  0x1b   : > { %v380_v40 = vld [vmem:[%s4471_s2 + $0x88] sm:$0xff]  ;;  %v381_v41 = vld [vmem:[%s4471_s2 + $0x90] sm:$0xff]  ;;  %v2582_v42 = vld [vmem:[%s4471_s2 + $0x138] sm:$0xff]  ;;  %p3221_p13 = pneg %p3220_p12 }
  0x1c   : > { %v2583_v43 = vld [vmem:[%s4471_s2 + $0x140] sm:$0xff]  ;;  %v382_v44 = vld [vmem:[%s4471_s2 + $0x98] sm:$0xff]  ;;  %v2584_v46 = vld [vmem:[%s4471_s2 + $0x148] sm:$0xff]  ;;  %p3227_p2 = por %p3226_p1, %p3225_p0 }
  0x1d   : > { %2926 = vmatmul.mubr.msk.f32.gmra.mxu1 %vm233_vm0, %v3395_v7  ;;  %2910 = vmatmul.mubr.msk.f32.gmra.mxu0 %vm233_vm0, %v3395_v7  ;;  %v383_v45 = vld [vmem:[%s4471_s2 + $0xa0] sm:$0xff]  ;;  %v3525_v47 = vld [vmem:[%s4470_s1 + $0x28] sm:$0xff]  ;;  %v2585_v48 = vld [vmem:[%s4471_s2 + $0x150] sm:$0xff] }
  0x1e   : > { %2928 = vmatprep.mubr.msk.f32.mxu1 %vm233_vm0, %v3399_v8  ;;  %2912 = vmatprep.mubr.msk.f32.mxu0 %vm233_vm0, %v3399_v8  ;;  %v384_v49 = vld [vmem:[%s4471_s2 + $0xa8] sm:$0xff]  ;;  %v385_v50 = vld [vmem:[%s4471_s2 + $0xb0] sm:$0xff]  ;;  %v2586_v51 = vld [vmem:[%s4471_s2 + $0x158] sm:$0xff]  ;;  %p3228_p3 = pnand %p3227_p2, %p3221_p13 }
  0x1f   : > { %v2587_v52 = vld [vmem:[%s4471_s2 + $0x160] sm:$0xff]  ;;  %v386_v53 = vld [vmem:[%s4471_s2 + $0xb8] sm:$0xff]  ;;  %v2588_v55 = vld [vmem:[%s4471_s2 + $0x168] sm:$0xff] }
  0x20   : > { %v387_v54 = vld [vmem:[%s4471_s2 + $0xc0] sm:$0xff]  ;;  %v2589_v56 = vld [vmem:[%s4471_s2 + $0x170] sm:$0xff]  ;;  %v388_v57 = vld [vmem:[%s4471_s2 + $0xc8] sm:$0xff] }
  0x21   : > { %2929 = vmatmul.mubr.msk.f32.gmra.mxu1 %vm233_vm0, %v3407_v9  ;;  %2913 = vmatmul.mubr.msk.f32.gmra.mxu0 %vm233_vm0, %v3407_v9  ;;  %v389_v58 = vld [vmem:[%s4471_s2 + $0xd0] sm:$0xff]  ;;  %v2590_v59 = vld [vmem:[%s4471_s2 + $0x178] sm:$0xff]  ;;  %v2591_v60 = vld [vmem:[%s4471_s2 + $0x180] sm:$0xff] }
  0x22   : > { %2931 = vmatprep.mubr.msk.f32.mxu1 %vm233_vm0, %v3411_v10  ;;  %2915 = vmatprep.mubr.msk.f32.mxu0 %vm233_vm0, %v3411_v10  ;;  %v390_v61 = vld [vmem:[%s4471_s2 + $0xd8] sm:$0xff]  ;;  %v391_v62 = vld [vmem:[%s4471_s2 + $0xe0] sm:$0xff]  ;;  %v2592_v63 = vld [vmem:[%s4471_s2 + $0x188] sm:$0xff] }
  0x23   : > { %v2593_v0 = vld [vmem:[%s4471_s2 + $0x190] sm:$0xff]  ;;  %v392_v1 = vld [vmem:[%s4471_s2 + $0xe8] sm:$0xff]  ;;  %v2594_v3 = vld [vmem:[%s4471_s2 + $0x198] sm:$0xff] }
  0x24   : > { %v393_v2 = vld [vmem:[%s4471_s2 + $0xf0] sm:$0xff] }
  0x25   : > { %2932 = vmatmul.mubr.msk.f32.gmra.mxu1 %vm233_vm0, %v3419_v11  ;;  %2916 = vmatmul.mubr.msk.f32.gmra.mxu0 %vm233_vm0, %v3419_v11 }
  0x26   : > { %2950 = vmatprep.mubr.msk.f32.mxu0 %vm536_vm1, %v2575_v12  ;;  %3032 = vmatprep.mubr.msk.f32.mxu1 %vm536_vm1, %v375_v13  ;;  %v2595_v12 = vld [vmem:[%s4471_s2 + $0x1a0] sm:$0xff]  ;;  %v394_v13 = vld [vmem:[%s4471_s2 + $0xf8] sm:$0xff] }
  0xd9   : > { %v2924_v14 = vpop.f32.mrf.mxu1  ;;  %v3435_v15 = vpop.f32.mrf.mxu0 }
  0xdb   : > { %v464_v16 = vpop.f32.mrf.mxu1  ;;  %v3437_v17 = vpop.f32.mrf.mxu0 }
  0xdd   : > { %v2927_v18 = vpop.f32.mrf.mxu1  ;;  %v3439_v19 = vpop.f32.mrf.mxu0 }
  0xdf   : > { %v474_v20 = vpop.f32.mrf.mxu1  ;;  %v3441_v21 = vpop.f32.mrf.mxu0 }
  0xe1   : > { %v2930_v22 = vpop.f32.mrf.mxu1  ;;  %v2914_v23 = vpop.f32.mrf.mxu0 }
  0xe3   : > { %v484_v24 = vpop.f32.mrf.mxu1  ;;  %v344_v25 = vpop.f32.mrf.mxu0 }
  0xe5   : > { %v2933_v26 = vpop.f32.mrf.mxu1  ;;  %v2917_v27 = vpop.f32.mrf.mxu0 }
  0xe6   : > { %2934 = vmatprep.subr.mxu0 %v2933_v26  ;;  %3142 = vmatprep.subr.mxu1 %v2917_v27 }
  0xe7   : > { %v494_v28 = vpop.f32.mrf.mxu1  ;;  %2935 = vmatpush3.msra.mxu0 %v2933_v26  ;;  %v354_v29 = vpop.f32.mrf.mxu0  ;;  %3150 = vmatpush3.msra.mxu1 %v2917_v27  ;;  %v364_v26 = vld [vmem:[%s4471_s2 + $0x8] sm:$0xff] }
  0xe8   : > { %2936 = vmatprep.subr.mxu0 %v494_v28  ;;  %3143 = vmatprep.subr.mxu1 %v354_v29 }
  0xe9   : > { %2937 = vmatpush3.msra.mxu0 %v494_v28  ;;  %3151 = vmatpush3.msra.mxu1 %v354_v29  ;;  %v2671_v28 = vld [vmem:[%s4470_s1 + $0x20] sm:$0xff] }
  0xea   : > { %2938 = vmatprep.subr.mxu0 %v2930_v22  ;;  %3144 = vmatprep.subr.mxu1 %v2914_v23 }
  0xeb   : > { %2939 = vmatpush3.msra.mxu0 %v2930_v22  ;;  %3152 = vmatpush3.msra.mxu1 %v2914_v23  ;;  %v2604_v22 = vld [vmem:[%s4471_s2 + $0x1e8] sm:$0xff] }
  0xec   : > { %2940 = vmatprep.subr.mxu0 %v484_v24  ;;  %3145 = vmatprep.subr.mxu1 %v344_v25 }
  0xed   : > { %2941 = vmatpush3.msra.mxu0 %v484_v24  ;;  %3153 = vmatpush3.msra.mxu1 %v344_v25  ;;  %v2606_v24 = vld [vmem:[%s4471_s2 + $0x1f8] sm:$0xff] }
  0xee   : > { %2942 = vmatprep.subr.mxu0 %v2927_v18  ;;  %3146 = vmatprep.subr.mxu1 %v3439_v19 }
  0xef   : > { %2943 = vmatpush3.msra.mxu0 %v2927_v18  ;;  %3154 = vmatpush3.msra.mxu1 %v3439_v19  ;;  %v2600_v18 = vld [vmem:[%s4471_s2 + $0x1c8] sm:$0xff] }
  0xf0   : > { %2944 = vmatprep.subr.mxu0 %v474_v20  ;;  %3147 = vmatprep.subr.mxu1 %v3441_v21 }
  0xf1   : > { %2945 = vmatpush3.msra.mxu0 %v474_v20  ;;  %3155 = vmatpush3.msra.mxu1 %v3441_v21  ;;  %v2602_v20 = vld [vmem:[%s4471_s2 + $0x1d8] sm:$0xff] }
  0xf2   : > { %2946 = vmatprep.subr.mxu0 %v2924_v14  ;;  %3148 = vmatprep.subr.mxu1 %v3435_v15 }
  0xf3   : > { %2947 = vmatpush3.msra.mxu0 %v2924_v14  ;;  %3156 = vmatpush3.msra.mxu1 %v3435_v15  ;;  %v2596_v14 = vld [vmem:[%s4471_s2 + $0x1a8] sm:$0xff] }
  0xf4   : > { %2948 = vmatprep.subr.mxu0 %v464_v16  ;;  %3149 = vmatprep.subr.mxu1 %v3437_v17 }
  0xf5   : > { %2949 = vmatpush3.msra.mxu0 %v464_v16  ;;  %3157 = vmatpush3.msra.mxu1 %v3437_v17  ;;  %v2598_v16 = vld [vmem:[%s4471_s2 + $0x1b8] sm:$0xff] }
  0xf6   : > { %2951 = vmatmul.mubr.msk.f32.vlgmr.msra.gmra.mxu0 %vm536_vm1, %v2576_v30  ;;  %2998 = vmatprep.subr.mxu0 %v2917_v27  ;;  %v367_v30 = vld [vmem:[%s4471_s2 + $0x20] sm:$0xff] }
  0xf7   : > { %2999 = vmatpush3.msra.mxu0 %v2917_v27  ;;  %2953 = vmatprep.mubr.msk.f32.mxu0 %vm536_vm1, %v2577_v31  ;;  %v365_v27 = vld [vmem:[%s4471_s2 + $0x10] sm:$0xff]  ;;  %v368_v31 = vld [vmem:[%s4471_s2 + $0x28] sm:$0xff] }
  0xf8   : > { %3000 = vmatprep.subr.mxu0 %v354_v29  ;;  %3033 = vmatmul.mubr.msk.f32.vlgmr.msra.gmra.mxu1 %vm536_vm1, %v376_v32  ;;  %v369_v32 = vld [vmem:[%s4471_s2 + $0x30] sm:$0xff] }
  0xf9   : > { %3001 = vmatpush3.msra.mxu0 %v354_v29  ;;  %3035 = vmatprep.mubr.msk.f32.mxu1 %vm536_vm1, %v377_v33  ;;  %v366_v29 = vld [vmem:[%s4471_s2 + $0x18] sm:$0xff] }
  0xfa   : > { %2954 = vmatmul.mubr.msk.f32.gmra.mxu0 %vm536_vm1, %v2578_v34  ;;  %3002 = vmatprep.subr.mxu0 %v2914_v23  ;;  %v370_v33 = vld [vmem:[%s4471_s2 + $0x38] sm:$0xff]  ;;  %v371_v34 = vld [vmem:[%s4471_s2 + $0x40] sm:$0xff] }
  0xfb   : > { %3003 = vmatpush3.msra.mxu0 %v2914_v23  ;;  %2956 = vmatprep.mubr.msk.f32.mxu0 %vm536_vm1, %v2579_v35  ;;  %v2605_v23 = vld [vmem:[%s4471_s2 + $0x1f0] sm:$0xff]  ;;  %v372_v35 = vld [vmem:[%s4471_s2 + $0x48] sm:$0xff] }
  0xfc   : > { %3004 = vmatprep.subr.mxu0 %v344_v25  ;;  %3036 = vmatmul.mubr.msk.f32.gmra.mxu1 %vm536_vm1, %v378_v36  ;;  %v373_v36 = vld [vmem:[%s4471_s2 + $0x50] sm:$0xff] }
  0xfd   : > { %3005 = vmatpush3.msra.mxu0 %v344_v25  ;;  %3038 = vmatprep.mubr.msk.f32.mxu1 %vm536_vm1, %v379_v37  ;;  %v363_v25 = vld [vmem:[%s4471_s2] sm:$0xff]  ;;  %v374_v37 = vld [vmem:[%s4471_s2 + $0x58] sm:$0xff] }
  0xfe   : > { %2957 = vmatmul.mubr.msk.f32.gmra.mxu0 %vm536_vm1, %v2580_v38  ;;  %3006 = vmatprep.subr.mxu0 %v3439_v19 }
  0xff   : > { %3007 = vmatpush3.msra.mxu0 %v3439_v19  ;;  %2959 = vmatprep.mubr.msk.f32.mxu0 %vm536_vm1, %v2581_v39  ;;  %v2601_v19 = vld [vmem:[%s4471_s2 + $0x1d0] sm:$0xff] }
 0x100   : > { %3008 = vmatprep.subr.mxu0 %v3441_v21  ;;  %3039 = vmatmul.mubr.msk.f32.gmra.mxu1 %vm536_vm1, %v380_v40 }
 0x101   : > { %3009 = vmatpush3.msra.mxu0 %v3441_v21  ;;  %3041 = vmatprep.mubr.msk.f32.mxu1 %vm536_vm1, %v381_v41  ;;  %v2603_v21 = vld [vmem:[%s4471_s2 + $0x1e0] sm:$0xff] }
 0x102   : > { %2960 = vmatmul.mubr.msk.f32.gmra.mxu0 %vm536_vm1, %v2582_v42  ;;  %3010 = vmatprep.subr.mxu0 %v3435_v15 }
 0x103   : > { %3011 = vmatpush3.msra.mxu0 %v3435_v15  ;;  %2962 = vmatprep.mubr.msk.f32.mxu0 %vm536_vm1, %v2583_v43  ;;  %v2597_v15 = vld [vmem:[%s4471_s2 + $0x1b0] sm:$0xff] }
 0x104   : > { %3012 = vmatprep.subr.mxu0 %v3437_v17  ;;  %3042 = vmatmul.mubr.msk.f32.gmra.mxu1 %vm536_vm1, %v382_v44 }
 0x105   : > { %3013 = vmatpush3.msra.mxu0 %v3437_v17  ;;  %3044 = vmatprep.mubr.msk.f32.mxu1 %vm536_vm1, %v383_v45  ;;  %v2599_v17 = vld [vmem:[%s4471_s2 + $0x1c0] sm:$0xff] }
 0x106   : > { %2963 = vmatmul.mubr.msk.f32.gmra.mxu0 %vm536_vm1, %v2584_v46  ;;  %3062 = vmatprep.subr.mxu0 %v3525_v47 }
 0x107   : > { %2965 = vmatprep.mubr.msk.f32.mxu0 %vm536_vm1, %v2585_v48 }
 0x108   : > { %3045 = vmatmul.mubr.msk.f32.gmra.mxu1 %vm536_vm1, %v384_v49 }
 0x109   : > { %3047 = vmatprep.mubr.msk.f32.mxu1 %vm536_vm1, %v385_v50 }
 0x10a   : > { %2966 = vmatmul.mubr.msk.f32.gmra.mxu0 %vm536_vm1, %v2586_v51 }
 0x10b   : > { %2968 = vmatprep.mubr.msk.f32.mxu0 %vm536_vm1, %v2587_v52 }
 0x10c   : > { %3048 = vmatmul.mubr.msk.f32.gmra.mxu1 %vm536_vm1, %v386_v53 }
 0x10d   : > { %3050 = vmatprep.mubr.msk.f32.mxu1 %vm536_vm1, %v387_v54 }
 0x10e   : > { %2969 = vmatmul.mubr.msk.f32.gmra.mxu0 %vm536_vm1, %v2588_v55 }
 0x10f   : > { %2971 = vmatprep.mubr.msk.f32.mxu0 %vm536_vm1, %v2589_v56 }
 0x110   : > { %3051 = vmatmul.mubr.msk.f32.gmra.mxu1 %vm536_vm1, %v388_v57 }
 0x111   : > { %3053 = vmatprep.mubr.msk.f32.mxu1 %vm536_vm1, %v389_v58 }
 0x112   : > { %2972 = vmatmul.mubr.msk.f32.gmra.mxu0 %vm536_vm1, %v2590_v59 }
 0x113   : > { %2974 = vmatprep.mubr.msk.f32.mxu0 %vm536_vm1, %v2591_v60 }
 0x114   : > { %3054 = vmatmul.mubr.msk.f32.gmra.mxu1 %vm536_vm1, %v390_v61 }
 0x115   : > { %3056 = vmatprep.mubr.msk.f32.mxu1 %vm536_vm1, %v391_v62 }
 0x116   : > { %2975 = vmatmul.mubr.msk.f32.gmra.mxu0 %vm536_vm1, %v2592_v63 }
 0x117   : > { %2977 = vmatprep.mubr.msk.f32.mxu0 %vm536_vm1, %v2593_v0 }
 0x118   : > { %3057 = vmatmul.mubr.msk.f32.gmra.mxu1 %vm536_vm1, %v392_v1 }
 0x119   : > { %3059 = vmatprep.mubr.msk.f32.mxu1 %vm536_vm1, %v393_v2 }
 0x11a   : > { %2978 = vmatmul.mubr.msk.f32.gmra.mxu0 %vm536_vm1, %v2594_v3 }
 0x11b   : > { %2980 = vmatprep.mubr.msk.f32.mxu0 %vm536_vm1, %v2595_v12 }
 0x11c   : > { %3060 = vmatmul.mubr.msk.f32.gmra.mxu1 %vm536_vm1, %v394_v13 }
 0x11e   : > { %2981 = vmatmul.mubr.msk.f32.gmra.mxu0 %vm536_vm1, %v2596_v14 }
 0x11f   : > { %2983 = vmatprep.mubr.msk.f32.mxu0 %vm536_vm1, %v2597_v15 }
 0x122   : > { %2984 = vmatmul.mubr.msk.f32.gmra.mxu0 %vm536_vm1, %v2598_v16 }
 0x123   : > { %2986 = vmatprep.mubr.msk.f32.mxu0 %vm536_vm1, %v2599_v17 }
 0x126   : > { %2987 = vmatmul.mubr.msk.f32.gmra.mxu0 %vm536_vm1, %v2600_v18 }
 0x127   : > { %2989 = vmatprep.mubr.msk.f32.mxu0 %vm536_vm1, %v2601_v19 }
 0x12a   : > { %2990 = vmatmul.mubr.msk.f32.gmra.mxu0 %vm536_vm1, %v2602_v20 }
 0x12b   : > { %2992 = vmatprep.mubr.msk.f32.mxu0 %vm536_vm1, %v2603_v21 }
 0x12e   : > { %2993 = vmatmul.mubr.msk.f32.gmra.mxu0 %vm536_vm1, %v2604_v22 }
 0x12f   : > { %2995 = vmatprep.mubr.msk.f32.mxu0 %vm536_vm1, %v2605_v23 }
 0x132   : > { %2996 = vmatmul.mubr.msk.f32.gmra.mxu0 %vm536_vm1, %v2606_v24 }
 0x133   : > { %3014 = vmatprep.mubr.msk.f32.mxu0 %vm536_vm1, %v363_v25 }
 0x136   : > { %3015 = vmatmul.mubr.msk.f32.vlgmr.msra.gmra.mxu0 %vm536_vm1, %v364_v26 }
 0x137   : > { %3017 = vmatprep.mubr.msk.f32.mxu0 %vm536_vm1, %v365_v27  ;;  %3063 = vmatpush3.msra.mxu0 %v3525_v47 }
 0x138   : > { %3064 = vmatprep.subr.mxu0 %v2671_v28 }
 0x139   : > { %3065 = vmatpush3.msra.mxu0 %v2671_v28 }
 0x13a   : > { %3018 = vmatmul.mubr.msk.f32.gmra.mxu0 %vm536_vm1, %v366_v29 }
 0x13b   : > { %3020 = vmatprep.mubr.msk.f32.mxu0 %vm536_vm1, %v367_v30 }
 0x13e   : > { %3021 = vmatmul.mubr.msk.f32.gmra.mxu0 %vm536_vm1, %v368_v31 }
 0x13f   : > { %3023 = vmatprep.mubr.msk.f32.mxu0 %vm536_vm1, %v369_v32 }
 0x142   : > { %3024 = vmatmul.mubr.msk.f32.gmra.mxu0 %vm536_vm1, %v370_v33 }
 0x143   : > { %3026 = vmatprep.mubr.msk.f32.mxu0 %vm536_vm1, %v371_v34 }
 0x146   : > { %3027 = vmatmul.mubr.msk.f32.gmra.mxu0 %vm536_vm1, %v372_v35 }
 0x147   : > { %3029 = vmatprep.mubr.msk.f32.mxu0 %vm536_vm1, %v373_v36 }
 0x14a   : > { %3030 = vmatmul.mubr.msk.f32.gmra.mxu0 %vm536_vm1, %v374_v37 }
 0x14b   : > { %3066 = vmatprep.mubr.msk.f32.mxu0 %vm233_vm0, %v3379_v4  ;;  %v2681_v4 = vld [vmem:[%s4471_s2 + $0x200] sm:$0xff] }
 0x14c   : > { %3094 = vmatprep.mubr.msk.f32.mxu1 %vm536_vm1, %v2681_v4 }
 0x14e   : > { %3067 = vmatmul.mubr.msk.f32.vlgmr.msra.gmra.mxu0 %vm233_vm0, %v3381_v5 }
 0x14f   : > { %3069 = vmatprep.mubr.msk.f32.mxu0 %vm233_vm0, %v3383_v6 }
 0x152   : > { %3070 = vmatmul.mubr.msk.f32.gmra.mxu0 %vm233_vm0, %v3395_v7 }
 0x153   : > { %3072 = vmatprep.mubr.msk.f32.mxu0 %vm233_vm0, %v3399_v8 }
 0x156   : > { %3073 = vmatmul.mubr.msk.f32.gmra.mxu0 %vm233_vm0, %v3407_v9 }
 0x157   : > { %3075 = vmatprep.mubr.msk.f32.mxu0 %vm233_vm0, %v3411_v10 }
 0x15a   : > { %3076 = vmatmul.mubr.msk.f32.gmra.mxu0 %vm233_vm0, %v3419_v11 }
 0x1b6   : > { %v3737_v5 = vpop.f32.mrf.mxu0 }
 0x1b8   : > { %v3739_v6 = vpop.f32.mrf.mxu0  ;;  %v3034_v7 = vpop.f32.mrf.mxu1 }
 0x1ba   : > { %v3741_v8 = vpop.f32.mrf.mxu0  ;;  %v1080_v9 = vpop.f32.mrf.mxu1 }
 0x1bc   : > { %v3743_v38 = vpop.f32.mrf.mxu0  ;;  %v3037_v10 = vpop.f32.mrf.mxu1 }
 0x1be   : > { %v3745_v39 = vpop.f32.mrf.mxu0  ;;  %v1090_v11 = vpop.f32.mrf.mxu1 }
 0x1c0   : > { %v3747_v40 = vpop.f32.mrf.mxu0  ;;  %v3040_v41 = vpop.f32.mrf.mxu1 }
 0x1c2   : > { %v3749_v42 = vpop.f32.mrf.mxu0  ;;  %v1100_v43 = vpop.f32.mrf.mxu1 }
 0x1c4   : > { %v3751_v44 = vpop.f32.mrf.mxu0  ;;  %v3043_v45 = vpop.f32.mrf.mxu1 }
 0x1c6   : > { %v3753_v46 = vpop.f32.mrf.mxu0  ;;  %v1110_v47 = vpop.f32.mrf.mxu1 }
 0x1c8   : > { %v3755_v48 = vpop.f32.mrf.mxu0  ;;  %v3046_v49 = vpop.f32.mrf.mxu1 }
 0x1ca   : > { %v3757_v50 = vpop.f32.mrf.mxu0  ;;  %v1120_v52 = vpop.f32.mrf.mxu1 }
 0x1cc   : > { %v3759_v51 = vpop.f32.mrf.mxu0  ;;  %v3049_v56 = vpop.f32.mrf.mxu1 }
 0x1ce   : > { %v2970_v53 = vpop.f32.mrf.mxu0  ;;  %v1130_v61 = vpop.f32.mrf.mxu1 }
 0x1cf   : > { %v3761_v54 = vadd.f32 %v3034_v7, %v2970_v53 }
 0x1d0   : > { %v759_v55 = vpop.f32.mrf.mxu0  ;;  %v3052_v2 = vpop.f32.mrf.mxu1 }
 0x1d1   : > { %v3763_v57 = vadd.f32 %v1080_v9, %v759_v55 }
 0x1d2   : > { %v2973_v58 = vpop.f32.mrf.mxu0  ;;  %v1140_v15 = vpop.f32.mrf.mxu1 }
 0x1d3   : > { %v3765_v59 = vadd.f32 %v3037_v10, %v2973_v58 }
 0x1d4   : > { %v769_v60 = vpop.f32.mrf.mxu0  ;;  %v3055_v20 = vpop.f32.mrf.mxu1 }
 0x1d5   : > { %v3767_v62 = vadd.f32 %v1090_v11, %v769_v60 }
 0x1d6   : > { %v2976_v63 = vpop.f32.mrf.mxu0  ;;  %v1150_v25 = vpop.f32.mrf.mxu1 }
 0x1d7   : > { %v3769_v0 = vadd.f32 %v3040_v41, %v2976_v63 }
 0x1d8   : > { %v779_v1 = vpop.f32.mrf.mxu0  ;;  %v3058_v30 = vpop.f32.mrf.mxu1 }
 0x1d9   : > { %v3771_v3 = vadd.f32 %v1100_v43, %v779_v1 }
 0x1da   : > { %v2979_v12 = vpop.f32.mrf.mxu0  ;;  %v1160_v35 = vpop.f32.mrf.mxu1 }
 0x1db   : > { %v3773_v13 = vadd.f32 %v3043_v45, %v2979_v12 }
 0x1dc   : > { %v789_v14 = vpop.f32.mrf.mxu0  ;;  %v3061_v9 = vpop.f32.mrf.mxu1 }
 0x1dd   : > { %v3775_v16 = vadd.f32 %v1110_v47, %v789_v14 }
 0x1de   : > { %v2982_v17 = vpop.f32.mrf.mxu0 }
 0x1df   : > { %v3777_v18 = vadd.f32 %v3046_v49, %v2982_v17 }
 0x1e0   : > { %v799_v19 = vpop.f32.mrf.mxu0 }
 0x1e1   : > { %v3779_v21 = vadd.f32 %v1120_v52, %v799_v19 }
 0x1e2   : > { %v2985_v22 = vpop.f32.mrf.mxu0 }
 0x1e3   : > { %v3781_v23 = vadd.f32 %v3049_v56, %v2985_v22 }
 0x1e4   : > { %v809_v24 = vpop.f32.mrf.mxu0 }
 0x1e5   : > { %v3783_v26 = vadd.f32 %v1130_v61, %v809_v24 }
 0x1e6   : > { %v2988_v27 = vpop.f32.mrf.mxu0 }
 0x1e7   : > { %v3785_v28 = vadd.f32 %v3052_v2, %v2988_v27 }
 0x1e8   : > { %v819_v29 = vpop.f32.mrf.mxu0 }
 0x1e9   : > { %v3787_v31 = vadd.f32 %v1140_v15, %v819_v29  ;;  %v2685_v29 = vld [vmem:[%s4471_s2 + $0x220] sm:$0xff] }
 0x1ea   : > { %v2991_v32 = vpop.f32.mrf.mxu0 }
 0x1eb   : > { %v3789_v33 = vadd.f32 %v3055_v20, %v2991_v32  ;;  %v2687_v32 = vld [vmem:[%s4471_s2 + $0x230] sm:$0xff] }
 0x1ec   : > { %v829_v34 = vpop.f32.mrf.mxu0 }
 0x1ed   : > { %v3791_v36 = vadd.f32 %v1150_v25, %v829_v34  ;;  %v2688_v34 = vld [vmem:[%s4471_s2 + $0x238] sm:$0xff] }
 0x1ee   : > { %v2994_v37 = vpop.f32.mrf.mxu0 }
 0x1ef   : > { %v3793_v4 = vadd.f32 %v3058_v30, %v2994_v37  ;;  %v2686_v30 = vld [vmem:[%s4471_s2 + $0x228] sm:$0xff] }
 0x1f0   : > { %v839_v7 = vpop.f32.mrf.mxu0  ;;  %v2690_v37 = vld [vmem:[%s4471_s2 + $0x248] sm:$0xff] }
 0x1f1   : > { %v3795_v10 = vadd.f32 %v1160_v35, %v839_v7  ;;  %v2689_v35 = vld [vmem:[%s4471_s2 + $0x240] sm:$0xff]  ;;  %v2691_v7 = vld [vmem:[%s4471_s2 + $0x250] sm:$0xff] }
 0x1f2   : > { %v2997_v11 = vpop.f32.mrf.mxu0 }
 0x1f3   : > { %v3797_v41 = vadd.f32 %v3061_v9, %v2997_v11  ;;  %v2692_v9 = vld [vmem:[%s4471_s2 + $0x258] sm:$0xff]  ;;  %v2693_v11 = vld [vmem:[%s4471_s2 + $0x260] sm:$0xff] }
 0x1f4   : > { %v3799_v43 = vpop.f32.mrf.mxu0 }
 0x1f6   : > { %v3016_v45 = vpop.f32.mrf.mxu0 }
 0x1f7   : > { %v3802_v47 = vadd.f32 %v3016_v45, %v3737_v5  ;;  %v2694_v45 = vld [vmem:[%s4471_s2 + $0x268] sm:$0xff] }
 0x1f8   : > { %v1020_v49 = vpop.f32.mrf.mxu0 }
 0x1f9   : > { %v3805_v52 = vadd.f32 %v1020_v49, %v3739_v6  ;;  %v2695_v49 = vld [vmem:[%s4471_s2 + $0x270] sm:$0xff] }
 0x1fa   : > { %v3019_v53 = vpop.f32.mrf.mxu0 }
 0x1fb   : > { %v3808_v55 = vadd.f32 %v3019_v53, %v3741_v8  ;;  %v2696_v53 = vld [vmem:[%s4471_s2 + $0x278] sm:$0xff] }
 0x1fc   : > { %v1030_v56 = vpop.f32.mrf.mxu0 }
 0x1fd   : > { %v3811_v58 = vadd.f32 %v1030_v56, %v3743_v38  ;;  %v2697_v56 = vld [vmem:[%s4471_s2 + $0x280] sm:$0xff] }
 0x1fe   : > { %v3022_v60 = vpop.f32.mrf.mxu0 }
 0x1ff   : > { %v3814_v61 = vadd.f32 %v3022_v60, %v3745_v39  ;;  %v2698_v60 = vld [vmem:[%s4471_s2 + $0x288] sm:$0xff] }
 0x200   : > { %v1040_v63 = vpop.f32.mrf.mxu0 }
 0x201   : > { %v3817_v5 = vadd.f32 %v1040_v63, %v3747_v40  ;;  %v2699_v63 = vld [vmem:[%s4471_s2 + $0x290] sm:$0xff] }
 0x202   : > { %v3025_v1 = vpop.f32.mrf.mxu0 }
 0x203   : > { %v3820_v6 = vadd.f32 %v3025_v1, %v3749_v42  ;;  %v2700_v1 = vld [vmem:[%s4471_s2 + $0x298] sm:$0xff] }
 0x204   : > { %v1050_v2 = vpop.f32.mrf.mxu0 }
 0x205   : > { %v3823_v8 = vadd.f32 %v1050_v2, %v3751_v44  ;;  %v2701_v2 = vld [vmem:[%s4471_s2 + $0x2a0] sm:$0xff] }
 0x206   : > { %v3028_v12 = vpop.f32.mrf.mxu0 }
 0x207   : > { %v3826_v38 = vadd.f32 %v3028_v12, %v3753_v46  ;;  %v2702_v12 = vld [vmem:[%s4471_s2 + $0x2a8] sm:$0xff] }
 0x208   : > { %v1060_v14 = vpop.f32.mrf.mxu0 }
 0x209   : > { %v3829_v39 = vadd.f32 %v1060_v14, %v3755_v48  ;;  %v2682_v48 = vld [vmem:[%s4471_s2 + $0x208] sm:$0xff]  ;;  %v2703_v14 = vld [vmem:[%s4471_s2 + $0x2b0] sm:$0xff] }
 0x20a   : > { %v3031_v15 = vpop.f32.mrf.mxu0 }
 0x20b   : > { %v3832_v40 = vadd.f32 %v3031_v15, %v3757_v50  ;;  %v2683_v50 = vld [vmem:[%s4471_s2 + $0x210] sm:$0xff]  ;;  %v2704_v15 = vld [vmem:[%s4471_s2 + $0x2b8] sm:$0xff] }
 0x20c   : > { %v1070_v17 = vpop.f32.mrf.mxu0 }
 0x20d   : > { %v3835_v42 = vadd.f32 %v1070_v17, %v3759_v51  ;;  %v2684_v51 = vld [vmem:[%s4471_s2 + $0x218] sm:$0xff]  ;;  %v2705_v17 = vld [vmem:[%s4471_s2 + $0x2c0] sm:$0xff] }
 0x20e   : > { %v3068_v19 = vpop.f32.mrf.mxu0 }
 0x210   : > { %v1248_v20 = vpop.f32.mrf.mxu0 }
 0x212   : > { %v3071_v44 = vpop.f32.mrf.mxu0 }
 0x214   : > { %v1258_v22 = vpop.f32.mrf.mxu0 }
 0x216   : > { %v3074_v24 = vpop.f32.mrf.mxu0 }
 0x218   : > { %v1268_v25 = vpop.f32.mrf.mxu0 }
 0x21a   : > { %v3077_v46 = vpop.f32.mrf.mxu0 }
 0x21b   : > { %3078 = vmatprep.subr.mxu1 %v3077_v46 }
 0x21c   : > { %v1278_v27 = vpop.f32.mrf.mxu0  ;;  %3079 = vmatpush3.msra.mxu1 %v3077_v46  ;;  %v2712_v46 = vld [vmem:[%s4471_s2 + $0x2f8] sm:$0xff] }
 0x21d   : > { %3080 = vmatprep.subr.mxu1 %v1278_v27 }
 0x21e   : > { %3081 = vmatpush3.msra.mxu1 %v1278_v27  ;;  %v3961_v27 = vpop.f32.mrf.mxu1 }
 0x21f   : > { %3082 = vmatprep.subr.mxu1 %v3074_v24 }
 0x220   : > { %3083 = vmatpush3.msra.mxu1 %v3074_v24  ;;  %v2710_v24 = vld [vmem:[%s4471_s2 + $0x2e8] sm:$0xff] }
 0x221   : > { %3084 = vmatprep.subr.mxu1 %v1268_v25 }
 0x222   : > { %3085 = vmatpush3.msra.mxu1 %v1268_v25  ;;  %v2711_v25 = vld [vmem:[%s4471_s2 + $0x2f0] sm:$0xff] }
 0x223   : > { %3086 = vmatprep.subr.mxu1 %v3071_v44 }
 0x224   : > { %3087 = vmatpush3.msra.mxu1 %v3071_v44  ;;  %v2708_v44 = vld [vmem:[%s4471_s2 + $0x2d8] sm:$0xff] }
 0x225   : > { %3088 = vmatprep.subr.mxu1 %v1258_v22 }
 0x226   : > { %3089 = vmatpush3.msra.mxu1 %v1258_v22  ;;  %v2709_v22 = vld [vmem:[%s4471_s2 + $0x2e0] sm:$0xff] }
 0x227   : > { %3090 = vmatprep.subr.mxu1 %v3068_v19 }
 0x228   : > { %3091 = vmatpush3.msra.mxu1 %v3068_v19  ;;  %v2706_v19 = vld [vmem:[%s4471_s2 + $0x2c8] sm:$0xff] }
 0x229   : > { %3092 = vmatprep.subr.mxu1 %v1248_v20 }
 0x22a   : > { %3093 = vmatpush3.msra.mxu1 %v1248_v20  ;;  %v2707_v20 = vld [vmem:[%s4471_s2 + $0x2d0] sm:$0xff] }
 0x22b   : > { %3095 = vmatmul.mubr.msk.f32.vlgmr.msra.gmra.mxu1 %vm536_vm1, %v2682_v48 }
 0x22c   : > { %3097 = vmatprep.mubr.msk.f32.mxu1 %vm536_vm1, %v2683_v50 }
 0x22f   : > { %3098 = vmatmul.mubr.msk.f32.gmra.mxu1 %vm536_vm1, %v2684_v51 }
 0x230   : > { %3100 = vmatprep.mubr.msk.f32.mxu1 %vm536_vm1, %v2685_v29 }
 0x233   : > { %3101 = vmatmul.mubr.msk.f32.gmra.mxu1 %vm536_vm1, %v2686_v30 }
 0x234   : > { %3103 = vmatprep.mubr.msk.f32.mxu1 %vm536_vm1, %v2687_v32 }
 0x237   : > { %3104 = vmatmul.mubr.msk.f32.gmra.mxu1 %vm536_vm1, %v2688_v34 }
 0x238   : > { %3106 = vmatprep.mubr.msk.f32.mxu1 %vm536_vm1, %v2689_v35 }
 0x23b   : > { %3107 = vmatmul.mubr.msk.f32.gmra.mxu1 %vm536_vm1, %v2690_v37 }
 0x23c   : > { %3109 = vmatprep.mubr.msk.f32.mxu1 %vm536_vm1, %v2691_v7 }
 0x23f   : > { %3110 = vmatmul.mubr.msk.f32.gmra.mxu1 %vm536_vm1, %v2692_v9 }
 0x240   : > { %3112 = vmatprep.mubr.msk.f32.mxu1 %vm536_vm1, %v2693_v11 }
 0x243   : > { %3113 = vmatmul.mubr.msk.f32.gmra.mxu1 %vm536_vm1, %v2694_v45 }
 0x244   : > { %3115 = vmatprep.mubr.msk.f32.mxu1 %vm536_vm1, %v2695_v49 }
 0x247   : > { %3116 = vmatmul.mubr.msk.f32.gmra.mxu1 %vm536_vm1, %v2696_v53 }
 0x248   : > { %3118 = vmatprep.mubr.msk.f32.mxu1 %vm536_vm1, %v2697_v56 }
 0x24b   : > { %3119 = vmatmul.mubr.msk.f32.gmra.mxu1 %vm536_vm1, %v2698_v60 }
 0x24c   : > { %3121 = vmatprep.mubr.msk.f32.mxu1 %vm536_vm1, %v2699_v63 }
 0x24f   : > { %3122 = vmatmul.mubr.msk.f32.gmra.mxu1 %vm536_vm1, %v2700_v1 }
 0x250   : > { %3124 = vmatprep.mubr.msk.f32.mxu1 %vm536_vm1, %v2701_v2 }
 0x253   : > { %3125 = vmatmul.mubr.msk.f32.gmra.mxu1 %vm536_vm1, %v2702_v12 }
 0x254   : > { %3127 = vmatprep.mubr.msk.f32.mxu1 %vm536_vm1, %v2703_v14 }
 0x257   : > { %3128 = vmatmul.mubr.msk.f32.gmra.mxu1 %vm536_vm1, %v2704_v15 }
 0x258   : > { %3130 = vmatprep.mubr.msk.f32.mxu1 %vm536_vm1, %v2705_v17 }
 0x25b   : > { %3131 = vmatmul.mubr.msk.f32.gmra.mxu1 %vm536_vm1, %v2706_v19 }
 0x25c   : > { %3133 = vmatprep.mubr.msk.f32.mxu1 %vm536_vm1, %v2707_v20 }
 0x25f   : > { %3134 = vmatmul.mubr.msk.f32.gmra.mxu1 %vm536_vm1, %v2708_v44 }
 0x260   : > { %3136 = vmatprep.mubr.msk.f32.mxu1 %vm536_vm1, %v2709_v22 }
 0x263   : > { %3137 = vmatmul.mubr.msk.f32.gmra.mxu1 %vm536_vm1, %v2710_v24 }
 0x264   : > { %3139 = vmatprep.mubr.msk.f32.mxu1 %vm536_vm1, %v2711_v25 }
 0x267   : > { %3140 = vmatmul.mubr.msk.f32.gmra.mxu1 %vm536_vm1, %v2712_v46 }
 0x2eb   : > { %v3096_v48 = vpop.f32.mrf.mxu1 }
 0x2ec   : > { %v3964_v50 = vadd.f32 %v3096_v48, %v3802_v47 }
 0x2ed   : > { %v1482_v51 = vpop.f32.mrf.mxu1 }
 0x2ee   : > { %v3967_v29 = vadd.f32 %v1482_v51, %v3805_v52  ;;  %v1677_v30 = vsel %vm1673_vm2, %v3964_v50, 0.0  ;;  %v1843_v32 = vmul.f32 %v3964_v50, %v3964_v50 }
 0x2ef   : > { %1678 = vadd.xlane.f32.xlu0 %v1677_v30  ;;  %v3099_v34 = vpop.f32.mrf.mxu1 }
 0x2f0   : > { %v3974_v35 = vadd.f32 %v3099_v34, %v3808_v55  ;;  %v1877_v37 = vsel %vm1673_vm2, %v1843_v32, 0.0  ;;  %v1674_v7 = vsel %vm1673_vm2, %v3967_v29, 0.0  ;;  %v1842_v52 = vmul.f32 %v3967_v29, %v3967_v29 }
 0x2f1   : > { %1878 = vadd.xlane.f32.xlu1 %v1877_v37  ;;  %v1492_v47 = vpop.f32.mrf.mxu1 }
 0x2f2   : > { %v3982_v11 = vadd.f32 %v1492_v47, %v3811_v58  ;;  %v1683_v45 = vsel %vm1673_vm2, %v3974_v35, 0.0  ;;  %v1874_v49 = vsel %vm1673_vm2, %v1842_v52, 0.0  ;;  %v1845_v53 = vmul.f32 %v3974_v35, %v3974_v35 }
 0x2f3   : > { %v3102_v9 = vpop.f32.mrf.mxu1  ;;  %1675 = vadd.xlane.f32.xlu0 %v1674_v7 }
 0x2f4   : > { %v3990_v60 = vadd.f32 %v3102_v9, %v3814_v61  ;;  %v1680_v63 = vsel %vm1673_vm2, %v3982_v11, 0.0  ;;  %v1883_v1 = vsel %vm1673_vm2, %v1845_v53, 0.0  ;;  %v1844_v2 = vmul.f32 %v3982_v11, %v3982_v11 }
 0x2f5   : > { %1684 = vadd.xlane.f32.xlu1 %v1683_v45  ;;  %v1502_v55 = vpop.f32.mrf.mxu1 }
 0x2f6   : > { %v1689_v12 = vsel %vm1673_vm2, %v3990_v60, 0.0  ;;  %v1847_v14 = vmul.f32 %v3990_v60, %v3990_v60  ;;  %v4002_v61 = vadd.f32 %v1502_v55, %v3817_v5  ;;  %v1880_v17 = vsel %vm1673_vm2, %v1844_v2, 0.0 }
 0x2f7   : > { %v3105_v56 = vpop.f32.mrf.mxu1  ;;  %1875 = vadd.xlane.f32.xlu0 %v1874_v49 }
 0x2f8   : > { %v4006_v19 = vadd.f32 %v3105_v56, %v3820_v6  ;;  %v1889_v20 = vsel %vm1673_vm2, %v1847_v14, 0.0  ;;  %v1686_v22 = vsel %vm1673_vm2, %v4002_v61, 0.0  ;;  %v1846_v24 = vmul.f32 %v4002_v61, %v4002_v61 }
 0x2f9   : > { %v1512_v58 = vpop.f32.mrf.mxu1  ;;  %1681 = vadd.xlane.f32.xlu1 %v1680_v63 }
 0x2fa   : > { %v1695_v5 = vsel %vm1673_vm2, %v4006_v19, 0.0  ;;  %v1849_v25 = vmul.f32 %v4006_v19, %v4006_v19  ;;  %v4018_v6 = vadd.f32 %v1512_v58, %v3823_v8  ;;  %v1886_v48 = vsel %vm1673_vm2, %v1846_v24, 0.0 }
 0x2fb   : > { %1884 = vadd.xlane.f32.xlu0 %v1883_v1  ;;  %v3108_v15 = vpop.f32.mrf.mxu1 }
 0x2fc   : > { %v4022_v51 = vadd.f32 %v3108_v15, %v3826_v38  ;;  %v1895_v30 = vsel %vm1673_vm2, %v1849_v25, 0.0  ;;  %v1692_v37 = vsel %vm1673_vm2, %v4018_v6, 0.0  ;;  %v1848_v47 = vmul.f32 %v4018_v6, %v4018_v6 }
 0x2fd   : > { %1690 = vadd.xlane.f32.xlu1 %v1689_v12  ;;  %v1522_v44 = vpop.f32.mrf.mxu1 }
 0x2fe   : > { %v4026_v34 = vadd.f32 %v1522_v44, %v3829_v39  ;;  %v1701_v8 = vsel %vm1673_vm2, %v4022_v51, 0.0  ;;  %v1892_v39 = vsel %vm1673_vm2, %v1848_v47, 0.0  ;;  %v1851_v9 = vmul.f32 %v4022_v51, %v4022_v51 }
 0x2ff   : > { %1881 = vadd.xlane.f32.xlu0 %v1880_v17  ;;  %v3111_v46 = vpop.f32.mrf.mxu1 }
 0x300   : > { %v1698_v38 = vsel %vm1673_vm2, %v4026_v34, 0.0  ;;  %v1850_v52 = vmul.f32 %v4026_v34, %v4026_v34  ;;  %v4042_v55 = vadd.f32 %v3111_v46, %v3832_v40  ;;  %v1901_v63 = vsel %vm1673_vm2, %v1851_v9, 0.0 }
 0x301   : > { %1890 = vadd.xlane.f32.xlu1 %v1889_v20  ;;  %v1532_v32 = vpop.f32.mrf.mxu1 }
 0x302   : > { %v1898_v49 = vsel %vm1673_vm2, %v1850_v52, 0.0  ;;  %v4053_v1 = vadd.f32 %v1532_v32, %v3835_v42  ;;  %v1707_v40 = vsel %vm1673_vm2, %v4042_v55, 0.0  ;;  %v1853_v14 = vmul.f32 %v4042_v55, %v4042_v55 }
 0x303   : > { %1687 = vadd.xlane.f32.xlu0 %v1686_v22  ;;  %v3114_v7 = vpop.f32.mrf.mxu1 }
 0x304   : > { %v4046_v53 = vadd.f32 %v3114_v7, %v3761_v54  ;;  %v1907_v20 = vsel %vm1673_vm2, %v1853_v14, 0.0 }
 0x305   : > { %1696 = vadd.xlane.f32.xlu1 %v1695_v5  ;;  %v1542_v45 = vpop.f32.mrf.mxu1 }
 0x306   : > { %v4049_v56 = vadd.f32 %v1542_v45, %v3763_v57  ;;  %v1855_v54 = vmul.f32 %v4046_v53, %v4046_v53  ;;  %v1704_v57 = vsel %vm1673_vm2, %v4053_v1, 0.0  ;;  %v1713_v5 = vsel %vm1673_vm2, %v4046_v53, 0.0 }
 0x307   : > { %1887 = vadd.xlane.f32.xlu0 %v1886_v48  ;;  %v3117_v58 = vpop.f32.mrf.mxu1 }
 0x308   : > { %v1710_v2 = vsel %vm1673_vm2, %v4049_v56, 0.0  ;;  %v4066_v42 = vadd.f32 %v3117_v58, %v3765_v59  ;;  %v1913_v15 = vsel %vm1673_vm2, %v1855_v54, 0.0  ;;  %v1852_v59 = vmul.f32 %v4053_v1, %v4053_v1 }
 0x309   : > { %1896 = vadd.xlane.f32.xlu1 %v1895_v30  ;;  %v1552_v12 = vpop.f32.mrf.mxu1  ;;  %v1854_v30 = vmul.f32 %v4049_v56, %v4049_v56 }
 0x30a   : > { %v4071_v44 = vadd.f32 %v1552_v12, %v3767_v62  ;;  %v1719_v22 = vsel %vm1673_vm2, %v4066_v42, 0.0  ;;  %v1857_v46 = vmul.f32 %v4066_v42, %v4066_v42  ;;  %v1904_v48 = vsel %vm1673_vm2, %v1852_v59, 0.0 }
 0x30b   : > { %1693 = vadd.xlane.f32.xlu0 %v1692_v37  ;;  %v3120_v17 = vpop.f32.mrf.mxu1 }
 0x30c   : > { %v1716_v25 = vsel %vm1673_vm2, %v4071_v44, 0.0  ;;  %v1919_v32 = vsel %vm1673_vm2, %v1857_v46, 0.0  ;;  %v1856_v37 = vmul.f32 %v4071_v44, %v4071_v44  ;;  %v4090_v47 = vadd.f32 %v3120_v17, %v3769_v0 }
 0x30d   : > { %1702 = vadd.xlane.f32.xlu1 %v1701_v8  ;;  %v1562_v24 = vpop.f32.mrf.mxu1 }
 0x30e   : > { %v4093_v7 = vadd.f32 %v1562_v24, %v3771_v3  ;;  %v1916_v52 = vsel %vm1673_vm2, %v1856_v37, 0.0  ;;  %v1725_v9 = vsel %vm1673_vm2, %v4090_v47, 0.0  ;;  %v1859_v3 = vmul.f32 %v4090_v47, %v4090_v47 }
 0x30f   : > { %1699 = vadd.xlane.f32.xlu0 %v1698_v38  ;;  %v3123_v62 = vpop.f32.mrf.mxu1  ;;  %v1910_v38 = vsel %vm1673_vm2, %v1854_v30, 0.0 }
 0x310   : > { %v1858_v45 = vmul.f32 %v4093_v7, %v4093_v7  ;;  %v1722_v0 = vsel %vm1673_vm2, %v4093_v7, 0.0  ;;  %v1925_v12 = vsel %vm1673_vm2, %v1859_v3, 0.0 }
 0x311   : > { %1893 = vadd.xlane.f32.xlu1 %v1892_v39  ;;  %v1572_v8 = vpop.f32.mrf.mxu1 }
 0x312   : > { %v1922_v58 = vsel %vm1673_vm2, %v1858_v45, 0.0  ;;  %v4117_v14 = vadd.f32 %v1572_v8, %v3775_v16 }
 0x313   : > { %1899 = vadd.xlane.f32.xlu0 %v1898_v49  ;;  %v3126_v39 = vpop.f32.mrf.mxu1 }
 0x315   : > { %1902 = vadd.xlane.f32.xlu1 %v1901_v63  ;;  %v1582_v49 = vpop.f32.mrf.mxu1  ;;  %v4106_v63 = vadd.f32 %v3123_v62, %v3773_v13 }
 0x316   : > { %v4113_v54 = vadd.f32 %v1582_v49, %v3779_v21  ;;  %v1728_v21 = vsel %vm1673_vm2, %v4117_v14, 0.0 }
 0x317   : > { %1708 = vadd.xlane.f32.xlu0 %v1707_v40  ;;  %v3280_v40 = vmov 0   ;;  %v1731_v13 = vsel %vm1673_vm2, %v4106_v63, 0.0 }
 0x318   : > { %3200 = vset.pattern.permute.xlu0 %v3280_v40  ;;  %3201 = vset.pattern.permute.xlu1 %v3280_v40  ;;  %v1862_v37 = vmul.f32 %v4113_v54, %v4113_v54 }
 0x319   : > { %1711 = vadd.xlane.f32.xlu1 %v1710_v2  ;;  %v4110_v2 = vadd.f32 %v3126_v39, %v3777_v18 }
 0x31a   : > { %v1934_v45 = vsel %vm1673_vm2, %v1862_v37, 0.0 }
 0x31b   : > { %1705 = vadd.xlane.f32.xlu0 %v1704_v57  ;;  %v3129_v57 = vpop.f32.mrf.mxu1  ;;  %v1863_v18 = vmul.f32 %v4110_v2, %v4110_v2  ;;  %v1737_v62 = vsel %vm1673_vm2, %v4110_v2, 0.0 }
 0x31c   : > { %v4130_v16 = vadd.f32 %v3129_v57, %v3781_v23  ;;  %v1860_v23 = vmul.f32 %v4117_v14, %v4117_v14 }
 0x31d   : > { %1914 = vadd.xlane.f32.xlu1 %v1913_v15  ;;  %v1734_v15 = vsel %vm1673_vm2, %v4113_v54, 0.0  ;;  %v1592_v17 = vpop.f32.mrf.mxu1 }
 0x31e   : > { %v4135_v59 = vadd.f32 %v1592_v17, %v3783_v26  ;;  %v1865_v30 = vmul.f32 %v4130_v16, %v4130_v16 }
 0x31f   : > { %1908 = vadd.xlane.f32.xlu0 %v1907_v20  ;;  %v1861_v20 = vmul.f32 %v4106_v63, %v4106_v63  ;;  %v3132_v24 = vpop.f32.mrf.mxu1 }
 0x320   : > { %v1943_v8 = vsel %vm1673_vm2, %v1865_v30, 0.0  ;;  %v4154_v39 = vadd.f32 %v3132_v24, %v3785_v28 }
 0x321   : > { %1720 = vadd.xlane.f32.xlu1 %v1719_v22  ;;  %v1937_v22 = vsel %vm1673_vm2, %v1863_v18, 0.0  ;;  %v1602_v46 = vpop.f32.mrf.mxu1 }
 0x322   : > { %v1749_v49 = vsel %vm1673_vm2, %v4154_v39, 0.0 }
 0x323   : > { %1714 = vadd.xlane.f32.xlu0 %v1713_v5  ;;  %v1931_v5 = vsel %vm1673_vm2, %v1861_v20, 0.0  ;;  %v3135_v26 = vpop.f32.mrf.mxu1 }
 0x325   : > { %1717 = vadd.xlane.f32.xlu1 %v1716_v25  ;;  %v1743_v25 = vsel %vm1673_vm2, %v4130_v16, 0.0 }
 0x327   : > { %1905 = vadd.xlane.f32.xlu0 %v1904_v48  ;;  %v1740_v48 = vsel %vm1673_vm2, %v4135_v59, 0.0 }
 0x329   : > { %1920 = vadd.xlane.f32.xlu1 %v1919_v32  ;;  %v1928_v32 = vsel %vm1673_vm2, %v1860_v23, 0.0 }
 0x32b   : > { %1911 = vadd.xlane.f32.xlu0 %v1910_v38  ;;  %v1864_v38 = vmul.f32 %v4135_v59, %v4135_v59 }
 0x32d   : > { %1917 = vadd.xlane.f32.xlu1 %v1916_v52  ;;  %v1612_v52 = vpop.f32.mrf.mxu1 }
 0x32e   : > { %v4181_v17 = vadd.f32 %v1612_v52, %v3791_v36 }
 0x32f   : > { %1726 = vadd.xlane.f32.xlu0 %v1725_v9  ;;  %v4157_v9 = vadd.f32 %v1602_v46, %v3787_v31  ;;  %v3138_v3 = vpop.f32.mrf.mxu1  ;;  %v1867_v31 = vmul.f32 %v4154_v39, %v4154_v39 }
 0x330   : > { %v1868_v46 = vmul.f32 %v4181_v17, %v4181_v17 }
 0x331   : > { %1723 = vadd.xlane.f32.xlu1 %v1722_v0  ;;  %v1940_v0 = vsel %vm1673_vm2, %v1864_v38, 0.0  ;;  %v1746_v28 = vsel %vm1673_vm2, %v4157_v9, 0.0  ;;  %v1622_v40 = vpop.f32.mrf.mxu1  ;;  %v1949_v18 = vsel %vm1673_vm2, %v1867_v31, 0.0 }
 0x332   : > { %v1952_v23 = vsel %vm1673_vm2, %v1868_v46, 0.0 }
 0x333   : > { %1923 = vadd.xlane.f32.xlu0 %v1922_v58  ;;  %v1866_v58 = vmul.f32 %v4157_v9, %v4157_v9  ;;  %v3141_v20 = vpop.f32.mrf.mxu1 }
 0x335   : > { %1926 = vadd.xlane.f32.xlu1 %v1925_v12  ;;  %v4170_v12 = vadd.f32 %v3135_v26, %v3789_v33  ;;  %v1946_v57 = vsel %vm1673_vm2, %v1866_v58, 0.0  ;;  %v1632_v24 = vpop.f32.mrf.mxu1 }
 0x337   : > { %1732 = vadd.xlane.f32.xlu0 %v1731_v13  ;;  %v4174_v13 = vadd.f32 %v3138_v3, %v3793_v4  ;;  %v1869_v26 = vmul.f32 %v4170_v12, %v4170_v12 }
 0x339   : > { %1735 = vadd.xlane.f32.xlu1 %v1734_v15  ;;  %v4177_v15 = vadd.f32 %v1622_v40, %v3795_v10  ;;  %v1871_v4 = vmul.f32 %v4174_v13, %v4174_v13  ;;  %v1752_v10 = vsel %vm1673_vm2, %v4181_v17, 0.0 }
 0x33b   : > { %1729 = vadd.xlane.f32.xlu0 %v1728_v21  ;;  %v1755_v21 = vsel %vm1673_vm2, %v4170_v12, 0.0  ;;  %v1758_v33 = vsel %vm1673_vm2, %v4177_v15, 0.0  ;;  %v1961_v36 = vsel %vm1673_vm2, %v1871_v4, 0.0 }
 0x33d   : > { %1938 = vadd.xlane.f32.xlu1 %v1937_v22  ;;  %v4192_v22 = vadd.f32 %v3141_v20, %v3797_v41 }
 0x33f   : > { %1932 = vadd.xlane.f32.xlu0 %v1931_v5  ;;  %v1171_v5 = vadd.f32 %v3961_v27, %v3799_v43  ;;  %v1767_v41 = vsel %vm1673_vm2, %v4192_v22, 0.0  ;;  %v1873_v37 = vmul.f32 %v4192_v22, %v4192_v22 }
 0x341   : > { %1744 = vadd.xlane.f32.xlu1 %v1743_v25  ;;  %v1761_v25 = vsel %vm1673_vm2, %v4174_v13, 0.0  ;;  %v1967_v38 = vsel %vm1673_vm2, %v1873_v37, 0.0 }
 0x343   : > { %1738 = vadd.xlane.f32.xlu0 %v1737_v62  ;;  %v4201_v62 = vadd.f32 %v1632_v24, %v1171_v5 }
 0x345   : > { %1741 = vadd.xlane.f32.xlu1 %v1740_v48  ;;  %v1870_v48 = vmul.f32 %v4177_v15, %v4177_v15  ;;  %v1764_v43 = vsel %vm1673_vm2, %v4201_v62, 0.0  ;;  %v1872_v27 = vmul.f32 %v4201_v62, %v4201_v62 }
 0x347   : > { %1929 = vadd.xlane.f32.xlu0 %v1928_v32  ;;  %v1958_v30 = vsel %vm1673_vm2, %v1870_v48, 0.0  ;;  %v1964_v32 = vsel %vm1673_vm2, %v1872_v27, 0.0 }
 0x349   : > { %1944 = vadd.xlane.f32.xlu1 %v1943_v8  ;;  %v1955_v8 = vsel %vm1673_vm2, %v1869_v26, 0.0 }
 0x34b   : > { %1935 = vadd.xlane.f32.xlu0 %v1934_v45 }
 0x34d   : > { %1941 = vadd.xlane.f32.xlu1 %v1940_v0 }
 0x34f   : > { %1750 = vadd.xlane.f32.xlu0 %v1749_v49 }
 0x351   : > { %1747 = vadd.xlane.f32.xlu1 %v1746_v28 }
 0x353   : > { %1947 = vadd.xlane.f32.xlu0 %v1946_v57 }
 0x355   : > { %1950 = vadd.xlane.f32.xlu1 %v1949_v18 }
 0x357   : > { %1756 = vadd.xlane.f32.xlu0 %v1755_v21 }
 0x359   : > { %1759 = vadd.xlane.f32.xlu1 %v1758_v33 }
 0x35b   : > { %1753 = vadd.xlane.f32.xlu0 %v1752_v10 }
 0x35d   : > { %1962 = vadd.xlane.f32.xlu1 %v1961_v36 }
 0x35f   : > { %1762 = vadd.xlane.f32.xlu0 %v1761_v25 }
 0x361   : > { %1768 = vadd.xlane.f32.xlu1 %v1767_v41 }
 0x363   : > { %1953 = vadd.xlane.f32.xlu0 %v1952_v23 }
 0x365   : > { %1765 = vadd.xlane.f32.xlu1 %v1764_v43 }
 0x367   : > { %1959 = vadd.xlane.f32.xlu0 %v1958_v30 }
 0x369   : > { %1965 = vadd.xlane.f32.xlu1 %v1964_v32 }
 0x36b   : > { %1956 = vadd.xlane.f32.xlu0 %v1955_v8 }
 0x36d   : > { %1968 = vadd.xlane.f32.xlu1 %v1967_v38 }
 0x378   : > { %v1679_v52 = vpop.xlane.xlu0 %1678 }
 0x37a   : > { %v1879_v45 = vpop.xlane.xlu1 %1878 }
 0x37c   : > { %v1676_v0 = vpop.xlane.xlu0 %1675 }
 0x37d   : > { %v1770_v58 = vadd.f32 %v1679_v52, %v1676_v0 }
 0x37e   : > { %v1685_v3 = vpop.xlane.xlu1 %1684 }
 0x380   : > { %v1876_v49 = vpop.xlane.xlu0 %1875 }
 0x381   : > { %v1970_v21 = vadd.f32 %v1879_v45, %v1876_v49 }
 0x382   : > { %v1682_v28 = vpop.xlane.xlu1 %1681 }
 0x383   : > { %v1771_v31 = vadd.f32 %v1770_v58, %v1682_v28 }
 0x384   : > { %v1885_v40 = vpop.xlane.xlu0 %1884 }
 0x385   : > { %v1772_v57 = vadd.f32 %v1771_v31, %v1685_v3 }
 0x386   : > { %v1691_v18 = vpop.xlane.xlu1 %1690 }
 0x387   : > { %v1773_v33 = vrot.slane %v1772_v57, 4 }
 0x388   : > { %v1882_v4 = vpop.xlane.xlu0 %1881 }
 0x389   : > { %v1774_v20 = vadd.f32 %v1773_v33, %v1772_v57  ;;  %v1971_v10 = vadd.f32 %v1970_v21, %v1882_v4 }
 0x38a   : > { %v1891_v36 = vpop.xlane.xlu1 %1890 }
 0x38b   : > { %v1775_v24 = vrot.slane %v1774_v20, 2  ;;  %v1972_v5 = vadd.f32 %v1971_v10, %v1885_v40 }
 0x38c   : > { %v1688_v25 = vpop.xlane.xlu0 %1687 }
 0x38d   : > { %v1776_v46 = vadd.f32 %v1775_v24, %v1774_v20  ;;  %v1973_v41 = vrot.slane %v1972_v5, 4  ;;  %v1779_v8 = vadd.f32 %v1691_v18, %v1688_v25 }
 0x38e   : > { %v1697_v23 = vpop.xlane.xlu1 %1696 }
 0x38f   : > { %v1777_v48 = vrot.slane %v1776_v46, 1  ;;  %v1974_v43 = vadd.f32 %v1973_v41, %v1972_v5 }
 0x390   : > { %v1888_v27 = vpop.xlane.xlu0 %1887 }
 0x391   : > { %v1778_v30 = vadd.f32 %v1777_v48, %v1776_v46  ;;  %v1975_v26 = vrot.slane %v1974_v43, 2  ;;  %v1979_v57 = vadd.f32 %v1891_v36, %v1888_v27 }
 0x392   : > { %v1897_v32 = vpop.xlane.xlu1 %1896 }
 0x393   : > { %v1976_v37 = vadd.f32 %v1975_v26, %v1974_v43  ;;  %v4220_v52 = vmul.f32 0.0009765625, %v1778_v30 }
 0x394   : > { %v1694_v38 = vpop.xlane.xlu0 %1693 }
 0x395   : > { %v1977_v45 = vrot.slane %v1976_v37, 1  ;;  %v1780_v0 = vadd.f32 %v1779_v8, %v1694_v38  ;;  %v2058_v31 = vmul.f32 %v4220_v52, %v4220_v52 }
 0x396   : > { %v1703_v3 = vpop.xlane.xlu1 %1702 }
 0x397   : > { %v1978_v49 = vadd.f32 %v1977_v45, %v1976_v37  ;;  %v1781_v58 = vadd.f32 %v1780_v0, %v1697_v23 }
 0x398   : > { %v1700_v28 = vpop.xlane.xlu0 %1699 }
 0x399   : > { %v2050_v40 = vmul.f32 0.0009765625, %v1978_v49  ;;  %v1782_v21 = vrot.slane %v1781_v58, 4  ;;  %v1788_v36 = vadd.f32 %v1703_v3, %v1700_v28 }
 0x39a   : > { %v1894_v33 = vpop.xlane.xlu1 %1893 }
 0x39b   : > { %v2066_v4 = vsub.f32 %v2050_v40, %v2058_v31  ;;  %v1783_v20 = vadd.f32 %v1782_v21, %v1781_v58  ;;  %v1980_v10 = vadd.f32 %v1979_v57, %v1894_v33  ;;  %v2146_v58 = vlaneseq }
 0x39c   : > { %v1900_v18 = vpop.xlane.xlu0 %1899 }
 0x39d   : > { %v2074_v24 = vmax.f32 %v2066_v4, 0.0  ;;  %v1784_v5 = vrot.slane %v1783_v20, 2  ;;  %v1981_v25 = vadd.f32 %v1980_v10, %v1897_v32 }
 0x39e   : > { %v1903_v46 = vpop.xlane.xlu1 %1902 }
 0x39f   : > { %v2082_v41 = vadd.f32 1e-05, %v2074_v24  ;;  %v1785_v48 = vadd.f32 %v1784_v5, %v1783_v20  ;;  %v1982_v43 = vrot.slane %v1981_v25, 4  ;;  %v2147_v20 = vshrl.u32 %v2146_v58, 7  ;;  %v2098_v5 = vld [vmem:[%s4472_s3] sm:$0x1] }
 0x3a0   : > { %v1709_v23 = vpop.xlane.xlu0 %1708 }
 0x3a1   : > { %3202 = vrsqrt.f32 %v2082_v41  ;;  %v1786_v30 = vrot.slane %v1785_v48, 1  ;;  %v1983_v26 = vadd.f32 %v1982_v43, %v1981_v25 }
 0x3a2   : > { %v1712_v37 = vpop.xlane.xlu1 %1711 }
 0x3a3   : > { %v1787_v8 = vadd.f32 %v1786_v30, %v1785_v48  ;;  %v1984_v27 = vrot.slane %v1983_v26, 2  ;;  %v4231_v30 = vsub.s32 0, %v2147_v20 }
 0x3a4   : > { %v1706_v38 = vpop.xlane.xlu0 %1705 }
 0x3a5   : > { %v1985_v45 = vadd.f32 %v1984_v27, %v1983_v26  ;;  %v1789_v0 = vadd.f32 %v1788_v36, %v1706_v38  ;;  %v4224_v31 = vmul.f32 0.0009765625, %v1787_v8  ;;  %v1988_v8 = vadd.f32 %v1903_v46, %v1900_v18 }
 0x3a6   : > { %v1915_v49 = vpop.xlane.xlu1 %1914 }
 0x3a7   : > { %v1986_v32 = vrot.slane %v1985_v45, 1  ;;  %v1790_v40 = vadd.f32 %v1789_v0, %v1709_v23  ;;  %v2059_v10 = vmul.f32 %v4224_v31, %v4224_v31 }
 0x3a8   : > { %v1909_v57 = vpop.xlane.xlu0 %1908 }
 0x3a9   : > { %v1987_v21 = vadd.f32 %v1986_v32, %v1985_v45  ;;  %v1791_v33 = vrot.slane %v1790_v40, 4 }
 0x3aa   : > { %v1721_v4 = vpop.xlane.xlu1 %1720 }
 0x3ab   : > { %v2051_v24 = vmul.f32 0.0009765625, %v1987_v21  ;;  %v1792_v3 = vadd.f32 %v1791_v33, %v1790_v40  ;;  %v2114_v40 = vld [vmem:[%s4473_s4] sm:$0x1] }
 0x3ac   : > { %v1715_v28 = vpop.xlane.xlu0 %1714 }
 0x3ad   : > { %v2067_v25 = vsub.f32 %v2051_v24, %v2059_v10  ;;  %v1793_v41 = vrot.slane %v1792_v3, 2  ;;  %v1797_v48 = vadd.f32 %v1715_v28, %v1712_v37 }
 0x3ae   : > { %v3203_v43 = vpop.eup %3202  ;;  %v1718_v23 = vpop.xlane.xlu1 %1717 }
 0x3af   : > { %v2075_v26 = vmax.f32 %v2067_v25, 0.0  ;;  %v1798_v36 = vadd.f32 %v1797_v48, %v1718_v23  ;;  %v2106_v27 = vmul.f32 %v3203_v43, %v2098_v5  ;;  %v1794_v0 = vadd.f32 %v1793_v41, %v1792_v3 }
 0x3b0   : > { %v1906_v38 = vpop.xlane.xlu0 %1905 }
 0x3b1   : > { %v2083_v45 = vadd.f32 1e-05, %v2075_v26  ;;  %v1799_v58 = vadd.f32 %v1798_v36, %v1721_v4  ;;  %v1989_v32 = vadd.f32 %v1988_v8, %v1906_v38  ;;  %v2149_v37 = vrot.slane %v2106_v27, %v4231_v30 }
 0x3b2   : > { %v1921_v21 = vpop.xlane.xlu1 %1920  ;;  %v2122_v33 = vmul.f32 %v2106_v27, %v4220_v52  ;;  %v1795_v24 = vrot.slane %v1794_v0, 1 }
 0x3b3   : > { %3204 = vrsqrt.f32 %v2083_v45  ;;  %v1800_v20 = vrot.slane %v1799_v58, 4  ;;  %v1990_v10 = vadd.f32 %v1989_v32, %v1909_v57  ;;  %2179 = vperm.xlu0 %3200, %v2149_v37  }
 0x3b4   : > { %v1912_v18 = vpop.xlane.xlu0 %1911  ;;  %v2130_v46 = vsub.f32 %v2114_v40, %v2122_v33  ;;  %v1796_v26 = vadd.f32 %v1795_v24, %v1794_v0 }
 0x3b5   : > { %v1801_v28 = vadd.f32 %v1800_v20, %v1799_v58  ;;  %v1991_v3 = vrot.slane %v1990_v10, 4  ;;  %v1997_v4 = vadd.f32 %v1915_v49, %v1912_v18  ;;  %v2099_v20 = vld [vmem:[%s4472_s3 + $0x1] sm:$0x1] }
 0x3b6   : > { %v1918_v5 = vpop.xlane.xlu1 %1917  ;;  %v2253_v25 = vrot.slane %v2130_v46, %v4231_v30  ;;  %v4239_v58 = vmul.f32 0.0009765625, %v1796_v26 }
 0x3b7   : > { %v1802_v41 = vrot.slane %v1801_v28, 2  ;;  %v1992_v48 = vadd.f32 %v1991_v3, %v1990_v10  ;;  %v1998_v43 = vadd.f32 %v1997_v4, %v1918_v5 }
 0x3b8   : > { %2283 = vperm.xlu1 %3201, %v2253_v25   ;;  %v1727_v23 = vpop.xlane.xlu0 %1726 }
 0x3b9   : > { %v1803_v52 = vadd.f32 %v1802_v41, %v1801_v28  ;;  %v1993_v8 = vrot.slane %v1992_v48, 2  ;;  %v1999_v36 = vadd.f32 %v1998_v43, %v1921_v21  ;;  %v2060_v21 = vmul.f32 %v4239_v58, %v4239_v58  ;;  %v2115_v41 = vld [vmem:[%s4473_s4 + $0x1] sm:$0x1] }
 0x3ba   : > { %v1724_v57 = vpop.xlane.xlu1 %1723 }
 0x3bb   : > { %v1804_v27 = vrot.slane %v1803_v52, 1  ;;  %v1994_v38 = vadd.f32 %v1993_v8, %v1992_v48  ;;  %v2000_v45 = vrot.slane %v1999_v36, 4  ;;  %v1806_v5 = vadd.f32 %v1727_v23, %v1724_v57 }
 0x3bc   : > { %v1924_v32 = vpop.xlane.xlu0 %1923 }
 0x3bd   : > { %v1995_v49 = vrot.slane %v1994_v38, 1  ;;  %v2001_v40 = vadd.f32 %v2000_v45, %v1999_v36  ;;  %v1805_v37 = vadd.f32 %v1804_v27, %v1803_v52 }
 0x3be   : > { %v1927_v33 = vpop.xlane.xlu1 %1926 }
 0x3bf   : > { %v1996_v10 = vadd.f32 %v1995_v49, %v1994_v38  ;;  %v2002_v0 = vrot.slane %v2001_v40, 2  ;;  %v4246_v4 = vmul.f32 0.0009765625, %v1805_v37 }
 0x3c0   : > { %v3205_v18 = vpop.eup %3204  ;;  %v1733_v46 = vpop.xlane.xlu0 %1732 }
 0x3c1   : > { %v2052_v24 = vmul.f32 0.0009765625, %v1996_v10  ;;  %v2003_v28 = vadd.f32 %v2002_v0, %v2001_v40  ;;  %v2107_v3 = vmul.f32 %v3205_v18, %v2099_v20  ;;  %v2061_v23 = vmul.f32 %v4246_v4, %v4246_v4 }
 0x3c2   : > { %v1736_v25 = vpop.xlane.xlu1 %1735 }
 0x3c3   : > { %v2068_v48 = vsub.f32 %v2052_v24, %v2060_v21  ;;  %v2004_v43 = vrot.slane %v2003_v28, 1  ;;  %v2153_v26 = vrot.slane %v2107_v3, %v4231_v30  ;;  %v2123_v52 = vmul.f32 %v2107_v3, %v4224_v31 }
 0x3c4   : > { %v1730_v8 = vpop.xlane.xlu0 %1729 }
 0x3c5   : > { %v2076_v36 = vmax.f32 %v2068_v48, 0.0  ;;  %v2005_v27 = vadd.f32 %v2004_v43, %v2003_v28  ;;  %v1807_v38 = vadd.f32 %v1806_v5, %v1730_v8  ;;  %2183 = vperm.xlu1 %3201, %v2153_v26   ;;  %v2131_v45 = vsub.f32 %v2115_v41, %v2123_v52 }
 0x3c6   : > { %v1939_v57 = vpop.xlane.xlu1 %1938  ;;  %v2006_v43 = vadd.f32 %v1927_v33, %v1924_v32 }
 0x3c7   : > { %v2084_v49 = vadd.f32 1e-05, %v2076_v36  ;;  %v2053_v40 = vmul.f32 0.0009765625, %v2005_v27  ;;  %v1808_v37 = vadd.f32 %v1807_v38, %v1733_v46  ;;  %v2257_v20 = vrot.slane %v2131_v45, %v4231_v30 }
 0x3c8   : > { %v1933_v10 = vpop.xlane.xlu0 %1932 }
 0x3c9   : > { %3206 = vrsqrt.f32 %v2084_v49  ;;  %v2069_v0 = vsub.f32 %v2053_v40, %v2061_v23  ;;  %v1809_v18 = vrot.slane %v1808_v37, 4  ;;  %2287 = vperm.xlu0 %3200, %v2257_v20  }
 0x3ca   : > { %v1745_v31 = vpop.xlane.xlu1 %1744 }
 0x3cb   : > { %v2077_v21 = vmax.f32 %v2069_v0, 0.0  ;;  %v1810_v24 = vadd.f32 %v1809_v18, %v1808_v37 }
 0x3cc   : > { %v1739_v28 = vpop.xlane.xlu0 %1738 }
 0x3cd   : > { %v2085_v3 = vadd.f32 1e-05, %v2077_v21  ;;  %v1811_v5 = vrot.slane %v1810_v24, 2  ;;  %v1815_v41 = vadd.f32 %v1739_v28, %v1736_v25  ;;  %v2100_v25 = vld [vmem:[%s4472_s3 + $0x2] sm:$0x1] }
 0x3ce   : > { %v1742_v48 = vpop.xlane.xlu1 %1741 }
 0x3cf   : > { %3208 = vrsqrt.f32 %v2085_v3  ;;  %v1816_v26 = vadd.f32 %v1815_v41, %v1742_v48  ;;  %v1812_v46 = vadd.f32 %v1811_v5, %v1810_v24  ;;  %v2116_v41 = vld [vmem:[%s4473_s4 + $0x2] sm:$0x1] }
 0x3d0   : > { %v1930_v52 = vpop.xlane.xlu0 %1929 }
 0x3d1   : > { %v1817_v8 = vadd.f32 %v1816_v26, %v1745_v31  ;;  %v2007_v36 = vadd.f32 %v2006_v43, %v1930_v52  ;;  %v1813_v49 = vrot.slane %v1812_v46, 1  ;;  %v2101_v26 = vld [vmem:[%s4472_s3 + $0x3] sm:$0x1] }
 0x3d2   : > { %v1945_v27 = vpop.xlane.xlu1 %1944 }
 0x3d3   : > { %v1818_v38 = vrot.slane %v1817_v8, 4  ;;  %v2008_v45 = vadd.f32 %v2007_v36, %v1933_v10  ;;  %v1814_v28 = vadd.f32 %v1813_v49, %v1812_v46 }
 0x3d4   : > { %v1936_v23 = vpop.xlane.xlu0 %1935 }
 0x3d5   : > { %v1819_v40 = vadd.f32 %v1818_v38, %v1817_v8  ;;  %v2009_v20 = vrot.slane %v2008_v45, 4  ;;  %v2015_v37 = vadd.f32 %v1939_v57, %v1936_v23 }
 0x3d6   : > { %v3207_v0 = vpop.eup %3206  ;;  %v1942_v18 = vpop.xlane.xlu1 %1941 }
 0x3d7   : > { %v1820_v32 = vrot.slane %v1819_v40, 2  ;;  %v2010_v33 = vadd.f32 %v2009_v20, %v2008_v45  ;;  %v2016_v21 = vadd.f32 %v2015_v37, %v1942_v18  ;;  %v2108_v31 = vmul.f32 %v3207_v0, %v2100_v25  ;;  %v2117_v18 = vld [vmem:[%s4473_s4 + $0x3] sm:$0x1] }
 0x3d8   : > { %v1751_v24 = vpop.xlane.xlu0 %1750  ;;  %v4267_v45 = vmul.f32 0.0009765625, %v1814_v28 }
 0x3d9   : > { %v1821_v3 = vadd.f32 %v1820_v32, %v1819_v40  ;;  %v2011_v5 = vrot.slane %v2010_v33, 2  ;;  %v2017_v10 = vadd.f32 %v2016_v21, %v1945_v27  ;;  %v2157_v48 = vrot.slane %v2108_v31, %v4231_v30 }
 0x3da   : > { %v1748_v57 = vpop.xlane.xlu1 %1747  ;;  %v2124_v43 = vmul.f32 %v2108_v31, %v4239_v58  ;;  %v2062_v21 = vmul.f32 %v4267_v45, %v4267_v45 }
 0x3db   : > { %v1822_v52 = vrot.slane %v1821_v3, 1  ;;  %v2012_v8 = vadd.f32 %v2011_v5, %v2010_v33  ;;  %v2018_v36 = vrot.slane %v2017_v10, 4  ;;  %2187 = vperm.xlu1 %3201, %v2157_v48  }
 0x3dc   : > { %v3209_v46 = vpop.eup %3208  ;;  %v1948_v38 = vpop.xlane.xlu0 %1947  ;;  %v2132_v27 = vsub.f32 %v2116_v41, %v2124_v43 }
 0x3dd   : > { %v2013_v23 = vrot.slane %v2012_v8, 1  ;;  %v2019_v49 = vadd.f32 %v2018_v36, %v2017_v10  ;;  %v2109_v40 = vmul.f32 %v3209_v46, %v2101_v26  ;;  %v1823_v58 = vadd.f32 %v1822_v52, %v1821_v3 }
 0x3de   : > { %v1951_v20 = vpop.xlane.xlu1 %1950  ;;  %v2261_v37 = vrot.slane %v2132_v27, %v4231_v30  ;;  %v1824_v26 = vadd.f32 %v1751_v24, %v1748_v57 }
 0x3df   : > { %v2014_v25 = vadd.f32 %v2013_v23, %v2012_v8  ;;  %v2020_v0 = vrot.slane %v2019_v49, 2  ;;  %v2125_v33 = vmul.f32 %v2109_v40, %v4246_v4  ;;  %v2161_v10 = vrot.slane %v2109_v40, %v4231_v30 }
 0x3e0   : > { %2291 = vperm.xlu1 %3201, %v2261_v37   ;;  %v1757_v32 = vpop.xlane.xlu0 %1756  ;;  %v4277_v3 = vmul.f32 0.0009765625, %v1823_v58 }
 0x3e1   : > { %v2054_v31 = vmul.f32 0.0009765625, %v2014_v25  ;;  %v2021_v28 = vadd.f32 %v2020_v0, %v2019_v49  ;;  %v2133_v41 = vsub.f32 %v2117_v18, %v2125_v33 }
 0x3e2   : > { %v1760_v5 = vpop.xlane.xlu1 %1759  ;;  %v2063_v23 = vmul.f32 %v4277_v3, %v4277_v3 }
 0x3e3   : > { %v2070_v48 = vsub.f32 %v2054_v31, %v2062_v21  ;;  %v2022_v43 = vrot.slane %v2021_v28, 1  ;;  %v2265_v8 = vrot.slane %v2133_v41, %v4231_v30 }
 0x3e4   : > { %2191 = vperm.xlu1 %3201, %v2161_v10   ;;  %v1754_v52 = vpop.xlane.xlu0 %1753 }
 0x3e5   : > { %v2078_v36 = vmax.f32 %v2070_v48, 0.0  ;;  %v2023_v4 = vadd.f32 %v2022_v43, %v2021_v28  ;;  %v1825_v46 = vadd.f32 %v1824_v26, %v1754_v52  ;;  %2295 = vperm.xlu0 %3200, %v2265_v8   ;;  %v2024_v43 = vadd.f32 %v1951_v20, %v1948_v38 }
 0x3e6   : > { %v1963_v27 = vpop.xlane.xlu1 %1962 }
 0x3e7   : > { %v2086_v49 = vadd.f32 1e-05, %v2078_v36  ;;  %v2055_v40 = vmul.f32 0.0009765625, %v2023_v4  ;;  %v1826_v37 = vadd.f32 %v1825_v46, %v1757_v32 }
 0x3e8   : > { %v1763_v58 = vpop.xlane.xlu0 %1762 }
 0x3e9   : > { %3210 = vrsqrt.f32 %v2086_v49  ;;  %v2071_v25 = vsub.f32 %v2055_v40, %v2063_v23  ;;  %v1827_v0 = vrot.slane %v1826_v37, 4  ;;  %v1833_v31 = vadd.f32 %v1763_v58, %v1760_v5  ;;  %v2102_v5 = vld [vmem:[%s4472_s3 + $0x4] sm:$0x1] }
 0x3ea   : > { %v1769_v24 = vpop.xlane.xlu1 %1768 }
 0x3eb   : > { %v2079_v57 = vmax.f32 %v2071_v25, 0.0  ;;  %v1828_v18 = vadd.f32 %v1827_v0, %v1826_v37 }
 0x3ec   : > { %v1954_v33 = vpop.xlane.xlu0 %1953 }
 0x3ed   : > { %v2087_v21 = vadd.f32 1e-05, %v2079_v57  ;;  %v1829_v10 = vrot.slane %v1828_v18, 2  ;;  %v2025_v36 = vadd.f32 %v2024_v43, %v1954_v33  ;;  %v2118_v33 = vld [vmem:[%s4473_s4 + $0x4] sm:$0x1] }
 0x3ee   : > { %v1766_v28 = vpop.xlane.xlu1 %1765 }
 0x3ef   : > { %3212 = vrsqrt.f32 %v2087_v21  ;;  %v1834_v41 = vadd.f32 %v1833_v31, %v1766_v28  ;;  %v1830_v32 = vadd.f32 %v1829_v10, %v1828_v18  ;;  %v2103_v28 = vld [vmem:[%s4472_s3 + $0x5] sm:$0x1] }
 0x3f0   : > { %v1960_v48 = vpop.xlane.xlu0 %1959 }
 0x3f1   : > { %v1835_v26 = vadd.f32 %v1834_v41, %v1769_v24  ;;  %v2033_v52 = vadd.f32 %v1963_v27, %v1960_v48  ;;  %v1831_v25 = vrot.slane %v1830_v32, 1 }
 0x3f2   : > { %v1966_v8 = vpop.xlane.xlu1 %1965 }
 0x3f3   : > { %v1836_v4 = vrot.slane %v1835_v26, 4  ;;  %v2034_v49 = vadd.f32 %v2033_v52, %v1966_v8  ;;  %v1832_v10 = vadd.f32 %v1831_v25, %v1830_v32 }
 0x3f4   : > { %v1957_v46 = vpop.xlane.xlu0 %1956 }
 0x3f5   : > { %v1837_v23 = vadd.f32 %v1836_v4, %v1835_v26  ;;  %v2026_v40 = vadd.f32 %v2025_v36, %v1957_v46 }
 0x3f6   : > { %v3211_v37 = vpop.eup %3210  ;;  %v1969_v58 = vpop.xlane.xlu1 %1968 }
 0x3f7   : > { %v1838_v0 = vrot.slane %v1837_v23, 2  ;;  %v2027_v57 = vrot.slane %v2026_v40, 4  ;;  %v2035_v38 = vadd.f32 %v2034_v49, %v1969_v58  ;;  %v2110_v20 = vmul.f32 %v3211_v37, %v2102_v5  ;;  %v2119_v5 = vld [vmem:[%s4473_s4 + $0x5] sm:$0x1] }
 0x3f8   : > { %v2048_v49 = vmul.f32 0.0009765625, %v1832_v10 }
 0x3f9   : > { %v1839_v27 = vadd.f32 %v1838_v0, %v1837_v23  ;;  %v2028_v24 = vadd.f32 %v2027_v57, %v2026_v40  ;;  %v2036_v18 = vrot.slane %v2035_v38, 4  ;;  %v2165_v21 = vrot.slane %v2110_v20, %v4231_v30 }
 0x3fa   : > { %v2126_v31 = vmul.f32 %v2110_v20, %v4267_v45 }
 0x3fb   : > { %v1840_v41 = vrot.slane %v1839_v27, 1  ;;  %v2029_v48 = vrot.slane %v2028_v24, 2  ;;  %v2037_v43 = vadd.f32 %v2036_v18, %v2035_v38  ;;  %2195 = vperm.xlu1 %3201, %v2165_v21   ;;  %v2064_v38 = vmul.f32 %v2048_v49, %v2048_v49 }
 0x3fc   : > { %v3213_v26 = vpop.eup %3212  ;;  %v2134_v52 = vsub.f32 %v2118_v33, %v2126_v31 }
 0x3fd   : > { %v1841_v8 = vadd.f32 %v1840_v41, %v1839_v27  ;;  %v2030_v36 = vadd.f32 %v2029_v48, %v2028_v24  ;;  %v2038_v4 = vrot.slane %v2037_v43, 2  ;;  %v2111_v46 = vmul.f32 %v3213_v26, %v2103_v28  ;;  %v2104_v48 = vld [vmem:[%s4472_s3 + $0x6] sm:$0x1]  ;;  %v2105_v26 = vld [vmem:[%s4472_s3 + $0x7] sm:$0x1] }
 0x3fe   : > { %v2269_v23 = vrot.slane %v2134_v52, %v4231_v30 }
 0x3ff   : > { %v2031_v40 = vrot.slane %v2030_v36, 1  ;;  %v2039_v45 = vadd.f32 %v2038_v4, %v2037_v43  ;;  %v2127_v32 = vmul.f32 %v2111_v46, %v4277_v3  ;;  %v2049_v37 = vmul.f32 0.0009765625, %v1841_v8 }
 0x400   : > { %2299 = vperm.xlu1 %3201, %v2269_v23   ;;  %v2169_v0 = vrot.slane %v2111_v46, %v4231_v30  ;;  %v2121_v23 = vld [vmem:[%s4473_s4 + $0x7] sm:$0x1] }
 0x401   : > { %v2032_v58 = vadd.f32 %v2031_v40, %v2030_v36  ;;  %v2040_v25 = vrot.slane %v2039_v45, 1  ;;  %v2135_v57 = vsub.f32 %v2119_v5, %v2127_v32  ;;  %v2065_v21 = vmul.f32 %v2049_v37, %v2049_v37  ;;  %v2120_v40 = vld [vmem:[%s4473_s4 + $0x6] sm:$0x1] }
 0x403   : > { %v2056_v20 = vmul.f32 0.0009765625, %v2032_v58  ;;  %v2041_v27 = vadd.f32 %v2040_v25, %v2039_v45  ;;  %v2273_v24 = vrot.slane %v2135_v57, %v4231_v30 }
 0x404   : > { %2199 = vperm.xlu1 %3201, %v2169_v0  }
 0x405   : > { %v2072_v18 = vsub.f32 %v2056_v20, %v2064_v38  ;;  %v2057_v33 = vmul.f32 0.0009765625, %v2041_v27  ;;  %2303 = vperm.xlu0 %3200, %v2273_v24  }
 0x407   : > { %v2080_v31 = vmax.f32 %v2072_v18, 0.0  ;;  %v2073_v28 = vsub.f32 %v2057_v33, %v2065_v21 }
 0x409   : > { %v2088_v10 = vadd.f32 1e-05, %v2080_v31  ;;  %v2081_v3 = vmax.f32 %v2073_v28, 0.0 }
 0x40b   : > { %3214 = vrsqrt.f32 %v2088_v10  ;;  %v2089_v41 = vadd.f32 1e-05, %v2081_v3 }
 0x40d   : > { %3216 = vrsqrt.f32 %v2089_v41 }
 0x418   : > { %v3215_v43 = vpop.eup %3214 }
 0x419   : > { %v2112_v52 = vmul.f32 %v3215_v43, %v2104_v48 }
 0x41a   : > { %v3217_v8 = vpop.eup %3216 }
 0x41b   : > { %v2173_v36 = vrot.slane %v2112_v52, %v4231_v30  ;;  %v2113_v4 = vmul.f32 %v3217_v8, %v2105_v26  ;;  %v2128_v46 = vmul.f32 %v2112_v52, %v2048_v49 }
 0x41d   : > { %2203 = vperm.xlu1 %3201, %v2173_v36   ;;  %v2129_v45 = vmul.f32 %v2113_v4, %v2049_v37  ;;  %v2177_v5 = vrot.slane %v2113_v4, %v4231_v30  ;;  %v2136_v58 = vsub.f32 %v2120_v40, %v2128_v46 }
 0x41f   : > { %v2137_v32 = vsub.f32 %v2121_v23, %v2129_v45  ;;  %v2277_v49 = vrot.slane %v2136_v58, %v4231_v30 }
 0x421   : > { %2207 = vperm.xlu1 %3201, %v2177_v5   ;;  %v2281_v25 = vrot.slane %v2137_v32, %v4231_v30 }
 0x423   : > { %2311 = vperm.xlu0 %3200, %v2281_v25  }
 0x425   : > { %2307 = vperm.xlu1 %3201, %v2277_v49  }
 0x42e   : > { %v2180_v0 = vpop.permute.xlu0 %2179 }
 0x42f   : > { %v2210_v57 = vmul.f32 %v2180_v0, %v3967_v29  ;;  %v2211_v38 = vmul.f32 %v2180_v0, %v3964_v50  ;;  %v2212_v37 = vmul.f32 %v2180_v0, %v3982_v11  ;;  %v2213_v20 = vmul.f32 %v2180_v0, %v3974_v35 }
 0x433   : > { %v2284_v27 = vpop.permute.xlu1 %2283 }
 0x434   : > { %v2314_v24 = vadd.f32 %v2284_v27, %v2210_v57  ;;  %v2315_v18 = vadd.f32 %v2284_v27, %v2211_v38  ;;  %v2316_v33 = vadd.f32 %v2284_v27, %v2212_v37  ;;  %v2317_v21 = vadd.f32 %v2284_v27, %v2213_v20 }
 0x436   : > { %vm2346_vm3 = vcmp.ge.f32.partialorder %v2314_v24, 0.0  ;;  %vm2347_vm4 = vcmp.ge.f32.partialorder %v2315_v18, 0.0  ;;  %vm2348_vm5 = vcmp.ge.f32.partialorder %v2316_v33, 0.0  ;;  %vm2349_vm6 = vcmp.ge.f32.partialorder %v2317_v21, 0.0 }
 0x437   : > { %v2378_v30 = vmul.f32 0.2, %v2314_v24  ;;  %v2379_v31 = vmul.f32 0.2, %v2315_v18  ;;  %v2380_v29 = vmul.f32 0.2, %v2316_v33 }
 0x438   : > { %v2381_v28 = vmul.f32 0.2, %v2317_v21 }
 0x439   : > { %v2410_v50 = vsel %vm2346_vm3, %v2314_v24, %v2378_v30  ;;  %v2411_v10 = vsel %vm2347_vm4, %v2315_v18, %v2379_v31  ;;  %v2412_v11 = vsel %vm2348_vm5, %v2316_v33, %v2380_v29 }
 0x43a   : > { %v2413_v3 = vsel %vm2349_vm6, %v2317_v21, %v2381_v28  ;;  %2442 = vst.msk [vmem:[%s4323_s8] sm:$0xff] %vm1673_vm2, %v2410_v50  ;;  %2443 = vst.msk [vmem:[%s4323_s8 + $0x8] sm:$0xff] %vm1673_vm2, %v2411_v10 }
 0x43b   : > { %2444 = vst.msk [vmem:[%s4323_s8 + $0x10] sm:$0xff] %vm1673_vm2, %v2412_v11  ;;  %2445 = vst.msk [vmem:[%s4323_s8 + $0x18] sm:$0xff] %vm1673_vm2, %v2413_v3 }
 0x440   : > { %v2184_v35 = vpop.permute.xlu1 %2183 }
 0x441   : > { %v2214_v41 = vmul.f32 %v2184_v35, %v4002_v61  ;;  %v2215_v48 = vmul.f32 %v2184_v35, %v3990_v60  ;;  %v2216_v43 = vmul.f32 %v2184_v35, %v4018_v6  ;;  %v2217_v26 = vmul.f32 %v2184_v35, %v4006_v19 }
 0x444   : > { %v2288_v52 = vpop.permute.xlu0 %2287 }
 0x445   : > { %v2318_v8 = vadd.f32 %v2288_v52, %v2214_v41  ;;  %v2319_v36 = vadd.f32 %v2288_v52, %v2215_v48  ;;  %v2320_v4 = vadd.f32 %v2288_v52, %v2216_v43  ;;  %v2321_v46 = vadd.f32 %v2288_v52, %v2217_v26 }
 0x447   : > { %vm2350_vm7 = vcmp.ge.f32.partialorder %v2318_v8, 0.0  ;;  %vm2351_vm8 = vcmp.ge.f32.partialorder %v2319_v36, 0.0  ;;  %vm2352_vm9 = vcmp.ge.f32.partialorder %v2320_v4, 0.0  ;;  %vm2353_vm10 = vcmp.ge.f32.partialorder %v2321_v46, 0.0 }
 0x448   : > { %v2382_v61 = vmul.f32 0.2, %v2318_v8  ;;  %v2383_v23 = vmul.f32 0.2, %v2319_v36  ;;  %v2384_v60 = vmul.f32 0.2, %v2320_v4 }
 0x449   : > { %v2385_v40 = vmul.f32 0.2, %v2321_v46 }
 0x44a   : > { %v2414_v6 = vsel %vm2350_vm7, %v2318_v8, %v2382_v61  ;;  %v2415_v45 = vsel %vm2351_vm8, %v2319_v36, %v2383_v23  ;;  %v2416_v19 = vsel %vm2352_vm9, %v2320_v4, %v2384_v60 }
 0x44b   : > { %v2417_v5 = vsel %vm2353_vm10, %v2321_v46, %v2385_v40  ;;  %2446 = vst.msk [vmem:[%s4323_s8 + $0x20] sm:$0xff] %vm1673_vm2, %v2414_v6  ;;  %2447 = vst.msk [vmem:[%s4323_s8 + $0x28] sm:$0xff] %vm1673_vm2, %v2415_v45 }
 0x44c   : > { %2448 = vst.msk [vmem:[%s4323_s8 + $0x30] sm:$0xff] %vm1673_vm2, %v2416_v19  ;;  %2449 = vst.msk [vmem:[%s4323_s8 + $0x38] sm:$0xff] %vm1673_vm2, %v2417_v5 }
 0x456   : > { %v2188_v32 = vpop.permute.xlu1 %2187 }
 0x457   : > { %v2218_v58 = vmul.f32 %v2188_v32, %v4026_v34  ;;  %v2219_v25 = vmul.f32 %v2188_v32, %v4022_v51  ;;  %v2220_v49 = vmul.f32 %v2188_v32, %v4053_v1  ;;  %v2221_v0 = vmul.f32 %v2188_v32, %v4042_v55 }
 0x45b   : > { %v2292_v57 = vpop.permute.xlu1 %2291 }
 0x45c   : > { %v2322_v38 = vadd.f32 %v2292_v57, %v2218_v58  ;;  %v2323_v37 = vadd.f32 %v2292_v57, %v2219_v25  ;;  %v2324_v20 = vadd.f32 %v2292_v57, %v2220_v49  ;;  %v2325_v27 = vadd.f32 %v2292_v57, %v2221_v0 }
 0x45e   : > { %vm2354_vm11 = vcmp.ge.f32.partialorder %v2322_v38, 0.0  ;;  %vm2355_vm12 = vcmp.ge.f32.partialorder %v2323_v37, 0.0  ;;  %vm2356_vm13 = vcmp.ge.f32.partialorder %v2324_v20, 0.0  ;;  %vm2357_vm14 = vcmp.ge.f32.partialorder %v2325_v27, 0.0 }
 0x45f   : > { %v2386_v24 = vmul.f32 0.2, %v2322_v38  ;;  %v2387_v34 = vmul.f32 0.2, %v2323_v37  ;;  %v2388_v18 = vmul.f32 0.2, %v2324_v20  ;;  %v2192_v51 = vpop.permute.xlu1 %2191 }
 0x460   : > { %v2389_v33 = vmul.f32 0.2, %v2325_v27  ;;  %v2222_v55 = vmul.f32 %v2192_v51, %v4049_v56  ;;  %v2223_v1 = vmul.f32 %v2192_v51, %v4046_v53  ;;  %v2224_v21 = vmul.f32 %v2192_v51, %v4071_v44  ;;  %v2296_v50 = vpop.permute.xlu0 %2295 }
 0x461   : > { %v2418_v30 = vsel %vm2354_vm11, %v2322_v38, %v2386_v24  ;;  %v2419_v31 = vsel %vm2355_vm12, %v2323_v37, %v2387_v34  ;;  %v2420_v29 = vsel %vm2356_vm13, %v2324_v20, %v2388_v18  ;;  %v2225_v28 = vmul.f32 %v2192_v51, %v4066_v42 }
 0x462   : > { %v2421_v10 = vsel %vm2357_vm14, %v2325_v27, %v2389_v33  ;;  %2450 = vst.msk [vmem:[%s4323_s8 + $0x40] sm:$0xff] %vm1673_vm2, %v2418_v30  ;;  %2451 = vst.msk [vmem:[%s4323_s8 + $0x48] sm:$0xff] %vm1673_vm2, %v2419_v31  ;;  %v2326_v11 = vadd.f32 %v2296_v50, %v2222_v55  ;;  %v2327_v56 = vadd.f32 %v2296_v50, %v2223_v1 }
 0x463   : > { %2452 = vst.msk [vmem:[%s4323_s8 + $0x50] sm:$0xff] %vm1673_vm2, %v2420_v29  ;;  %v2328_v3 = vadd.f32 %v2296_v50, %v2224_v21  ;;  %2453 = vst.msk [vmem:[%s4323_s8 + $0x58] sm:$0xff] %vm1673_vm2, %v2421_v10  ;;  %v2329_v53 = vadd.f32 %v2296_v50, %v2225_v28 }
 0x464   : > { %vm2358_vm15 = vcmp.ge.f32.partialorder %v2326_v11, 0.0  ;;  %vm2359_vm0 = vcmp.ge.f32.partialorder %v2327_v56, 0.0  ;;  %v2390_v42 = vmul.f32 0.2, %v2326_v11  ;;  %v2391_v44 = vmul.f32 0.2, %v2327_v56 }
 0x465   : > { %vm2360_vm1 = vcmp.ge.f32.partialorder %v2328_v3, 0.0  ;;  %vm2361_vm3 = vcmp.ge.f32.partialorder %v2329_v53, 0.0  ;;  %v2392_v35 = vmul.f32 0.2, %v2328_v3  ;;  %v2393_v41 = vmul.f32 0.2, %v2329_v53 }
 0x466   : > { %v2422_v48 = vsel %vm2358_vm15, %v2326_v11, %v2390_v42  ;;  %v2423_v43 = vsel %vm2359_vm0, %v2327_v56, %v2391_v44 }
 0x467   : > { %v2424_v26 = vsel %vm2360_vm1, %v2328_v3, %v2392_v35  ;;  %2454 = vst.msk [vmem:[%s4323_s8 + $0x60] sm:$0xff] %vm1673_vm2, %v2422_v48  ;;  %v2425_v52 = vsel %vm2361_vm3, %v2329_v53, %v2393_v41  ;;  %2455 = vst.msk [vmem:[%s4323_s8 + $0x68] sm:$0xff] %vm1673_vm2, %v2423_v43 }
 0x468   : > { %2456 = vst.msk [vmem:[%s4323_s8 + $0x70] sm:$0xff] %vm1673_vm2, %v2424_v26  ;;  %2457 = vst.msk [vmem:[%s4323_s8 + $0x78] sm:$0xff] %vm1673_vm2, %v2425_v52 }
 0x476   : > { %v2196_v8 = vpop.permute.xlu1 %2195 }
 0x477   : > { %v2226_v36 = vmul.f32 %v2196_v8, %v4093_v7  ;;  %v2227_v4 = vmul.f32 %v2196_v8, %v4090_v47  ;;  %v2228_v46 = vmul.f32 %v2196_v8, %v4117_v14  ;;  %v2229_v61 = vmul.f32 %v2196_v8, %v4106_v63 }
 0x47b   : > { %v2300_v23 = vpop.permute.xlu1 %2299 }
 0x47c   : > { %v2330_v60 = vadd.f32 %v2300_v23, %v2226_v36  ;;  %v2331_v40 = vadd.f32 %v2300_v23, %v2227_v4  ;;  %v2332_v6 = vadd.f32 %v2300_v23, %v2228_v46  ;;  %v2333_v45 = vadd.f32 %v2300_v23, %v2229_v61 }
 0x47e   : > { %vm2362_vm4 = vcmp.ge.f32.partialorder %v2330_v60, 0.0  ;;  %vm2363_vm5 = vcmp.ge.f32.partialorder %v2331_v40, 0.0  ;;  %vm2364_vm6 = vcmp.ge.f32.partialorder %v2332_v6, 0.0  ;;  %vm2365_vm7 = vcmp.ge.f32.partialorder %v2333_v45, 0.0 }
 0x47f   : > { %v2394_v19 = vmul.f32 0.2, %v2330_v60  ;;  %v2395_v7 = vmul.f32 0.2, %v2331_v40  ;;  %v2396_v5 = vmul.f32 0.2, %v2332_v6  ;;  %v2200_v47 = vpop.permute.xlu1 %2199 }
 0x480   : > { %v2397_v32 = vmul.f32 0.2, %v2333_v45  ;;  %v2230_v63 = vmul.f32 %v2200_v47, %v4113_v54  ;;  %v2231_v14 = vmul.f32 %v2200_v47, %v4110_v2  ;;  %v2232_v58 = vmul.f32 %v2200_v47, %v4135_v59  ;;  %v2304_v38 = vpop.permute.xlu0 %2303 }
 0x481   : > { %v2426_v25 = vsel %vm2362_vm4, %v2330_v60, %v2394_v19  ;;  %v2427_v49 = vsel %vm2363_vm5, %v2331_v40, %v2395_v7  ;;  %v2428_v0 = vsel %vm2364_vm6, %v2332_v6, %v2396_v5  ;;  %v2233_v57 = vmul.f32 %v2200_v47, %v4130_v16 }
 0x482   : > { %v2429_v37 = vsel %vm2365_vm7, %v2333_v45, %v2397_v32  ;;  %2458 = vst.msk [vmem:[%s4323_s8 + $0x80] sm:$0xff] %vm1673_vm2, %v2426_v25  ;;  %2459 = vst.msk [vmem:[%s4323_s8 + $0x88] sm:$0xff] %vm1673_vm2, %v2427_v49  ;;  %v2334_v20 = vadd.f32 %v2304_v38, %v2230_v63  ;;  %v2335_v54 = vadd.f32 %v2304_v38, %v2231_v14 }
 0x483   : > { %2460 = vst.msk [vmem:[%s4323_s8 + $0x90] sm:$0xff] %vm1673_vm2, %v2428_v0  ;;  %v2336_v27 = vadd.f32 %v2304_v38, %v2232_v58  ;;  %2461 = vst.msk [vmem:[%s4323_s8 + $0x98] sm:$0xff] %vm1673_vm2, %v2429_v37  ;;  %v2337_v2 = vadd.f32 %v2304_v38, %v2233_v57 }
 0x484   : > { %vm2366_vm8 = vcmp.ge.f32.partialorder %v2334_v20, 0.0  ;;  %vm2367_vm9 = vcmp.ge.f32.partialorder %v2335_v54, 0.0  ;;  %v2398_v16 = vmul.f32 0.2, %v2334_v20  ;;  %v2399_v59 = vmul.f32 0.2, %v2335_v54 }
 0x485   : > { %vm2368_vm10 = vcmp.ge.f32.partialorder %v2336_v27, 0.0  ;;  %vm2369_vm11 = vcmp.ge.f32.partialorder %v2337_v2, 0.0  ;;  %v2400_v24 = vmul.f32 0.2, %v2336_v27  ;;  %v2401_v34 = vmul.f32 0.2, %v2337_v2 }
 0x486   : > { %v2430_v18 = vsel %vm2366_vm8, %v2334_v20, %v2398_v16  ;;  %v2431_v51 = vsel %vm2367_vm9, %v2335_v54, %v2399_v59 }
 0x487   : > { %v2432_v33 = vsel %vm2368_vm10, %v2336_v27, %v2400_v24  ;;  %2462 = vst.msk [vmem:[%s4323_s8 + $0xa0] sm:$0xff] %vm1673_vm2, %v2430_v18  ;;  %v2433_v55 = vsel %vm2369_vm11, %v2337_v2, %v2401_v34  ;;  %2463 = vst.msk [vmem:[%s4323_s8 + $0xa8] sm:$0xff] %vm1673_vm2, %v2431_v51 }
 0x488   : > { %2464 = vst.msk [vmem:[%s4323_s8 + $0xb0] sm:$0xff] %vm1673_vm2, %v2432_v33  ;;  %2465 = vst.msk [vmem:[%s4323_s8 + $0xb8] sm:$0xff] %vm1673_vm2, %v2433_v55 }
 0x498   : > { %v2204_v1 = vpop.permute.xlu1 %2203 }
 0x499   : > { %v2234_v53 = vmul.f32 %v2204_v1, %v4157_v9  ;;  %v2235_v42 = vmul.f32 %v2204_v1, %v4154_v39  ;;  %v2236_v44 = vmul.f32 %v2204_v1, %v4181_v17  ;;  %v2237_v35 = vmul.f32 %v2204_v1, %v4170_v12 }
 0x49c   : > { %v2208_v21 = vpop.permute.xlu1 %2207 }
 0x49d   : > { %v2238_v30 = vmul.f32 %v2208_v21, %v4177_v15  ;;  %v2239_v31 = vmul.f32 %v2208_v21, %v4174_v13  ;;  %v2240_v29 = vmul.f32 %v2208_v21, %v4201_v62  ;;  %v2241_v28 = vmul.f32 %v2208_v21, %v4192_v22 }
 0x49e   : > { %v2312_v50 = vpop.permute.xlu0 %2311 }
 0x49f   : > { %v2342_v10 = vadd.f32 %v2312_v50, %v2238_v30  ;;  %v2343_v11 = vadd.f32 %v2312_v50, %v2239_v31  ;;  %v2344_v56 = vadd.f32 %v2312_v50, %v2240_v29  ;;  %v2345_v3 = vadd.f32 %v2312_v50, %v2241_v28 }
 0x4a0   : > { %v2308_v15 = vpop.permute.xlu1 %2307 }
 0x4a1   : > { %vm2374_vm12 = vcmp.ge.f32.partialorder %v2342_v10, 0.0  ;;  %vm2375_vm13 = vcmp.ge.f32.partialorder %v2343_v11, 0.0  ;;  %vm2376_vm14 = vcmp.ge.f32.partialorder %v2344_v56, 0.0  ;;  %vm2377_vm15 = vcmp.ge.f32.partialorder %v2345_v3, 0.0 }
 0x4a2   : > { %v2406_v13 = vmul.f32 0.2, %v2342_v10  ;;  %v2407_v22 = vmul.f32 0.2, %v2343_v11  ;;  %v2408_v62 = vmul.f32 0.2, %v2344_v56  ;;  %v2338_v9 = vadd.f32 %v2308_v15, %v2234_v53 }
 0x4a3   : > { %v2409_v41 = vmul.f32 0.2, %v2345_v3  ;;  %v2339_v39 = vadd.f32 %v2308_v15, %v2235_v42  ;;  %v2340_v17 = vadd.f32 %v2308_v15, %v2236_v44  ;;  %v2341_v48 = vadd.f32 %v2308_v15, %v2237_v35 }
 0x4a4   : > { %v2438_v12 = vsel %vm2374_vm12, %v2342_v10, %v2406_v13  ;;  %v2439_v43 = vsel %vm2375_vm13, %v2343_v11, %v2407_v22  ;;  %v2440_v26 = vsel %vm2376_vm14, %v2344_v56, %v2408_v62  ;;  %vm2370_vm0 = vcmp.ge.f32.partialorder %v2338_v9, 0.0 }
 0x4a5   : > { %v2441_v52 = vsel %vm2377_vm15, %v2345_v3, %v2409_v41  ;;  %2470 = vst.msk [vmem:[%s4323_s8 + $0xe0] sm:$0xff] %vm1673_vm2, %v2438_v12  ;;  %2471 = vst.msk [vmem:[%s4323_s8 + $0xe8] sm:$0xff] %vm1673_vm2, %v2439_v43  ;;  %vm2371_vm1 = vcmp.ge.f32.partialorder %v2339_v39, 0.0  ;;  %vm2372_vm3 = vcmp.ge.f32.partialorder %v2340_v17, 0.0  ;;  %vm2373_vm4 = vcmp.ge.f32.partialorder %v2341_v48, 0.0 }
 0x4a6   : > { %2472 = vst.msk [vmem:[%s4323_s8 + $0xf0] sm:$0xff] %vm1673_vm2, %v2440_v26  ;;  %2473 = vst.msk [vmem:[%s4323_s8 + $0xf8] sm:$0xff] %vm1673_vm2, %v2441_v52  ;;  %v2402_v8 = vmul.f32 0.2, %v2338_v9  ;;  %v2403_v36 = vmul.f32 0.2, %v2339_v39 }
 0x4a7   : > { %v2404_v4 = vmul.f32 0.2, %v2340_v17  ;;  %v2405_v46 = vmul.f32 0.2, %v2341_v48 }
 0x4a8   : > { %v2434_v61 = vsel %vm2370_vm0, %v2338_v9, %v2402_v8  ;;  %v2435_v23 = vsel %vm2371_vm1, %v2339_v39, %v2403_v36 }
 0x4a9   : > { %v2436_v60 = vsel %vm2372_vm3, %v2340_v17, %v2404_v4  ;;  %v2437_v40 = vsel %vm2373_vm4, %v2341_v48, %v2405_v46  ;;  %2466 = vst.msk [vmem:[%s4323_s8 + $0xc0] sm:$0xff] %vm1673_vm2, %v2434_v61  ;;  %2467 = vst.msk [vmem:[%s4323_s8 + $0xc8] sm:$0xff] %vm1673_vm2, %v2435_v23 }
 0x4aa   : > { %2468 = vst.msk [vmem:[%s4323_s8 + $0xd0] sm:$0xff] %vm1673_vm2, %v2436_v60  ;;  %2469 = vst.msk [vmem:[%s4323_s8 + $0xd8] sm:$0xff] %vm1673_vm2, %v2437_v40 }
 0x4ab   : > { %3231 = shalt.err (!%p3228_p3)
}
 0x4ac   : > { %s3232_s23 = scalar_lea.hbm %s4414_s12, 4096  ;;  %s3236_s30 = scalar_lea.hbm %s4474_s5, 8192 }
 0x4ad   : > { %p3233_p4 = scmp.ne.s32.totalorder %s4414_s12, %s3232_s23  ;;  %p3237_p9 = scmp.lt.s32.totalorder %s4414_s12, %s4474_s5 }
 0x4ae   : > { %p3238_p10 = scmp.lt.s32.totalorder %s3236_s30, %s3232_s23 }
 0x4af   : > { %p3234_p7 = pnand %p3233_p4, %p3352_p5 }
 0x4b0   : > { %p3239_p11 = por %p3238_p10, %p3237_p9 }
 0x4b1   : > { %p3235_p8 = pneg %p3234_p7 }
 0x4b3   : > { %p3240_p12 = pnand %p3239_p11, %p3235_p8 }
 0x4b5   : > { %3243 = shalt.err (!%p3240_p12)
}
 0x4b6   : > { %s3282_s8 = smov 128   ;;  %s3283_s9 = smov 8  }
 0x4b7   : > { %3158 = dma.vmem_to_hbm [thread:$0]  (%p3352_p5), %s4416_s10, 4096, %s4414_s12, %s4429_s13, %s3282_s8, %s3282_s8, %s3283_s9  }
 0x4b8 PF: > { %p3164_p13 = scmp.ge.s32.totalorder %s3278_s21, 2  ;;  %s2503_s22 = sand.u32 1, %s3266_s18  }
 0x4b9   : > { %s2504_s11 = scalar_lea.sflag [#allocation3], %s2503_s22 }
 0x4ba   : > { %p3161_p0 = pnand %p3164_p13, %p3356_p6 }
 0x4bc   : > { %p3162_p1 = pneg %p3161_p0 }
 0x4be   : > { %3261 = dma.done.wait (%p3162_p1), %s2504_s11, 4096  }
 0x4bf   : > { %3263 = vsyncadd (%p3162_p1), %s2504_s11, 4294963200  ;;  %p15_p2 = scmp.ge.s32.totalorder %s3339_s24, 4   ;;  %s4477_s18 = smov %s3270_s19 }
 0x4c0   : > { %s4478_s19 = smov %s3274_s20  ;;  %s4479_s20 = smov %s3350_s27 }
 0x4c1   : > { %s4480_s21 = smov %s3339_s24  ;;  %17 = sbr.rel (!%p15_p2) target bundleno = 3 (0x3), region = 79 }
 0x4c6   :  { %2509 = vsyncpa [#allocation3], 1 }
 0x4c7   :  { %2511 = vsyncpa [#allocation3 + $0x1], 1 }

</bundles_post_ra>
